<compile_context>
chip_gen: v6e
topology: v6e:2x2x1
jax: 0.10.0
libtpu: 0.0.40
codegen_flags: <defaults>
</compile_context>

<pallas_src>
import functools
import math

import jax
import jax.numpy as jnp
from jax.experimental import pallas as pl
from jax.experimental.pallas import tpu as pltpu

LN_EPS = 1e-5
NEG_BIG = -1e30

_PARAM_ORDER = ("ln1_w", "ln1_b",
                "wq", "bq", "wk", "bk", "wv", "bv", "wo", "bo",
                "ln2_w", "ln2_b",
                "w1", "b1", "w2", "b2",
                "wout", "bout")


def _round_up(x, m):
    return (x + m - 1) // m * m


def _gelu(x, approximate=False):
    if approximate:
        # tanh approximation: transcendental goes to the EUP slot instead of a
        # long erf polynomial on the VALU (FFN hidden is the largest elementwise
        # tensor in the kernel).
        c = 0.7978845608028654  # sqrt(2/pi)
        return 0.5 * x * (1.0 + jnp.tanh(c * (x + 0.044715 * x * x * x)))
    # nn.GELU() default: exact erf formulation.
    return 0.5 * x * (1.0 + jax.lax.erf(x * 0.7071067811865476))


# --------------------------------- kernel ---------------------------------
def make_encoder_kernel(mode, num_heads, h_true, dk_true, s_true, s_pad,
                        kv_tile, matmul_dtype, gelu_approx):
    """mode: 'self' (q == k, attention residual) or 'cross' (q != k, no residual)."""
    cdt = matmul_dtype
    scale = float(dk_true) ** (-0.5)
    inv_h = 1.0 / float(h_true)
    n_act = 2 if mode == "self" else 3
    n_kv = s_pad // kv_tile

    def _ln(x, w_ref, b_ref, mask):
        # LayerNorm over the TRUE hidden size; padded lanes of x are zero, so
        # sums over the padded lane dim equal the true sums.
        mu = jnp.sum(x, axis=-1, keepdims=True) * inv_h
        c = x - mu
        if mask is not None:
            c = c * mask                       # zero out padded lanes
        var = jnp.sum(c * c, axis=-1, keepdims=True) * inv_h
        return c * jax.lax.rsqrt(var + LN_EPS) * w_ref[...] + b_ref[...]

    def _lin(x, w_ref, b_ref):
        # Matmul in `cdt` (bf16 on request), accumulate + bias add in f32.
        return jnp.dot(x.astype(cdt), w_ref[...].astype(cdt),
                       preferred_element_type=jnp.float32) + b_ref[...]

    def kernel(*refs):
        act_refs = refs[:n_act]
        (ln1_w, ln1_b, wq, bq, wk, bk, wv, bv, wo, bo,
         ln2_w, ln2_b, w1, b1, w2, b2, wout, bout) = refs[n_act:n_act + 18]
        o_ref, kcache, vcache = refs[n_act + 18:]

        q_ref = act_refs[0]
        hp = q_ref.shape[-1]
        nh = num_heads
        dkp = hp // nh

        mask = None
        if hp != h_true:
            mask = (jax.lax.broadcasted_iota(jnp.int32, (1, hp), 1)
                    < h_true).astype(jnp.float32)

        # ---- K/V cache: LN + K/V projections + head-major relayout computed
        # ONCE per batch (first sequence tile) and reused by every q tile. ----
        @pl.when(pl.program_id(1) == 0)
        def _fill_kv_cache():
            if mode == "self":
                kvn = _ln(act_refs[1][0].astype(jnp.float32), ln1_w, ln1_b, mask)
                kn = kvn
                vn = kvn
            else:
                kn = _ln(act_refs[1][0].astype(jnp.float32), ln1_w, ln1_b, mask)
                vn = _ln(act_refs[2][0].astype(jnp.float32), ln1_w, ln1_b, mask)
            kp = _lin(kn, wk, bk)                         # (S_pad, Hp) f32
            vp = _lin(vn, wv, bv)
            kcache[...] = jnp.transpose(kp.reshape(s_pad, nh, dkp),
                                        (1, 0, 2)).astype(kcache.dtype)
            vcache[...] = jnp.transpose(vp.reshape(s_pad, nh, dkp),
                                        (1, 0, 2)).astype(vcache.dtype)

        # ---- per-tile query path ----
        xq = q_ref[0].astype(jnp.float32)                 # (tS, Hp)
        qn = _ln(xq, ln1_w, ln1_b, mask)
        qp = _lin(qn, wq, bq)
        ts = qp.shape[0]
        qh = jnp.transpose((qp * scale).reshape(ts, nh, dkp),
                           (1, 0, 2)).astype(cdt)         # (nh, tS, dkp)

        def scores(k_blk, width, off):
            s = jnp.einsum("hqd,hkd->hqk", qh, k_blk,
                           preferred_element_type=jnp.float32)
            if off + width > s_true:                      # static: padded keys
                kmask = (jax.lax.broadcasted_iota(jnp.int32, (1, 1, width), 2)
                         < (s_true - off))
                s = jnp.where(kmask, s, NEG_BIG)
            return s

        if n_kv == 1:
            kb = kcache[...].astype(cdt)
            vb = vcache[...].astype(cdt)
            s = scores(kb, s_pad, 0)
            s = s - jnp.max(s, axis=-1, keepdims=True)
            p = jnp.exp(s)
            denom = jnp.sum(p, axis=-1, keepdims=True)
            p = p * pl.reciprocal(denom, approx=True)     # divide on EUP
            o = jnp.einsum("hqk,hkd->hqd", p.astype(cdt), vb,
                           preferred_element_type=jnp.float32)
        else:
            # Flash-style online softmax over KV chunks: the (nh, tS, S) score
            # tensor is never materialized; VMEM is bounded by the chunk size.
            m = jnp.full((nh, ts, 1), NEG_BIG, jnp.float32)
            l = jnp.zeros((nh, ts, 1), jnp.float32)
            acc = jnp.zeros((nh, ts, dkp), jnp.float32)
            for c in range(n_kv):                         # static trip count
                off = c * kv_tile
                kb = kcache[:, off:off + kv_tile, :].astype(cdt)
                vb = vcache[:, off:off + kv_tile, :].astype(cdt)
                s = scores(kb, kv_tile, off)
                m_new = jnp.maximum(m, jnp.max(s, axis=-1, keepdims=True))
                alpha = jnp.exp(m - m_new)
                p = jnp.exp(s - m_new)
                l = alpha * l + jnp.sum(p, axis=-1, keepdims=True)
                acc = alpha * acc + jnp.einsum(
                    "hqk,hkd->hqd", p.astype(cdt), vb,
                    preferred_element_type=jnp.float32)
                m = m_new
            o = acc * pl.reciprocal(l, approx=True)       # (nh, tS, dkp)

        # Output projection folded per head (wo is head-major (nh, dkp, Hp)):
        # avoids the (nh,tS,dkp) -> (tS,Hp) transpose/concat relayout.
        attn = jnp.einsum("hqd,hdo->hqo", o.astype(cdt), wo[...].astype(cdt),
                          preferred_element_type=jnp.float32)
        attn = jnp.sum(attn, axis=0) + bo[...]

        # Residual around attention only when q == k (torch semantics).
        x = attn if mode == "cross" else xq + attn

        # FFN block with residual.
        y = _ln(x, ln2_w, ln2_b, mask)
        y = _lin(y, w1, b1)
        y = _gelu(y, gelu_approx)
        y = _lin(y, w2, b2)
        x = x + y

        # Final output projection (lane-dense padded output, sliced on host).
        o_ref[0] = _lin(x, wout, bout).astype(o_ref.dtype)

    return kernel


# --------------------------- host-side padding ---------------------------
def _prepare_params(params, H, num_heads, Hp, Fp, Op, matmul_dtype):
    """Zero-pad parameters to lane-dense (128-multiple) shapes.

    Q/K/V weights are padded head-wise (head h occupies lanes [h*dkp,(h+1)*dkp))
    so head semantics are exact; wo stays head-major (nh, dkp, Hp) for the
    folded per-head output projection.  Biases / LN params become (1, N).
    """
    nh = num_heads
    dk = H // nh
    dkp = Hp // nh

    def pad_to(a, shape):
        widths = [(0, t - s) for s, t in zip(a.shape, shape)]
        if not any(w[1] for w in widths):
            return a
        return jnp.pad(a, widths)

    out = {}
    for name in ("ln1_w", "ln1_b", "ln2_w", "ln2_b"):
        out[name] = pad_to(params[name], (Hp,)).reshape(1, Hp)

    def pad_qkv_w(w):                     # (H, H) -> (Hp, Hp), head-aware cols
        w = w.reshape(H, nh, dk)
        return pad_to(w, (Hp, nh, dkp)).reshape(Hp, Hp).astype(matmul_dtype)

    def pad_head_b(b):                    # (H,) -> (1, Hp), head-aware
        b = b.reshape(nh, dk)
        return pad_to(b, (nh, dkp)).reshape(1, Hp)

    out["wq"] = pad_qkv_w(params["wq"]); out["bq"] = pad_head_b(params["bq"])
    out["wk"] = pad_qkv_w(params["wk"]); out["bk"] = pad_head_b(params["bk"])
    out["wv"] = pad_qkv_w(params["wv"]); out["bv"] = pad_head_b(params["bv"])

    wo = params["wo"].reshape(nh, dk, H)  # head-major, kept 3-D
    out["wo"] = pad_to(wo, (nh, dkp, Hp)).astype(matmul_dtype)
    out["bo"] = pad_to(params["bo"], (Hp,)).reshape(1, Hp)

    out["w1"] = pad_to(params["w1"], (Hp, Fp)).astype(matmul_dtype)
    out["b1"] = pad_to(params["b1"], (Fp,)).reshape(1, Fp)
    out["w2"] = pad_to(params["w2"], (Fp, Hp)).astype(matmul_dtype)
    out["b2"] = pad_to(params["b2"], (Hp,)).reshape(1, Hp)
    out["wout"] = pad_to(params["wout"], (Hp, Op)).astype(matmul_dtype)
    out["bout"] = pad_to(params["bout"], (Op,)).reshape(1, Op)
    return out


# ----------------------------- device helpers -----------------------------
def _vmem_capacity_bytes():
    try:
        return int(pltpu.get_tpu_info().vmem_capacity_bytes)
    except Exception:
        return 64 << 20            # conservative default: v7x per-TC VMEM


def _auto_matmul_dtype():
    # Review: default to bf16 matmuls (f32 accumulation) on v6e / v7x.
    try:
        kind = jax.devices()[0].device_kind.lower()
    except Exception:
        return jnp.float32
    if any(tag in kind for tag in ("v6", "v7", "7x")):
        return jnp.bfloat16
    return jnp.float32


# -------------------------------- wrapper --------------------------------
def encoder_layer_pallas(q, k, v, params, num_heads, *, same_qk,
                         matmul_dtype=None, gelu_approx=False,
                         seq_tile=128, kv_tile=256):
    """q, k, v: (B, S, H) float32.  Returns (B, S, out_size).

    `same_qk` must be supplied statically by the caller (mirrors torch's
    `q.equal(k)` branch) so this wrapper stays jax.jit-compatible and avoids a
    device->host sync per call.
    """
    B, S, H = q.shape
    assert H % num_heads == 0
    assert seq_tile % 8 == 0 and kv_tile % 8 == 0
    if matmul_dtype is None:
        matmul_dtype = _auto_matmul_dtype()
    out_size = params["wout"].shape[1]
    ffn_size = params["w1"].shape[1]
    dk = H // num_heads

    # Lane-dense padded sizes (multiples of 128; Hp also divisible by heads).
    Hp = _round_up(H, math.lcm(128, num_heads))
    Fp = _round_up(ffn_size, 128)
    Op = _round_up(out_size, 128)
    dkp = Hp // num_heads

    # Sequence tiling: queries / FFN rows / output rows are tiled; S is padded
    # on the host so tiling always applies (padded keys masked in-kernel,
    # padded query/output rows sliced off below).
    tS = min(seq_tile, _round_up(S, 8))
    S_pad = _round_up(S, tS)
    nst = S_pad // tS
    tKV = min(kv_tile, S_pad)
    if S_pad % tKV != 0:
        tKV = tS

    mode = "self" if same_qk else "cross"

    # bf16 matmuls -> also DMA activations in bf16 (halves K/V HBM traffic and
    # VMEM footprint); LayerNorm / softmax / GELU stay f32 in-kernel.
    act_dtype = (jnp.bfloat16
                 if jnp.dtype(matmul_dtype) == jnp.dtype(jnp.bfloat16)
                 else jnp.float32)

    def pad_act(a):
        a = jnp.pad(a, ((0, 0), (0, S_pad - S), (0, Hp - H)))
        return a.astype(act_dtype)

    padded = _prepare_params(params, H, num_heads, Hp, Fp, Op, matmul_dtype)
    ordered = [padded[n] for n in _PARAM_ORDER]

    q_p = pad_act(q)
    act_inputs = [q_p]
    act_specs = [pl.BlockSpec((1, tS, Hp), lambda b, s: (b, s, 0))]
    # Full-S K/V block: index_map is constant in s, so Pallas only re-DMAs it
    # when the batch index changes.
    kv_spec = pl.BlockSpec((1, S_pad, Hp), lambda b, s: (b, 0, 0))
    if mode == "self":
        act_inputs.append(q_p)
        act_specs.append(kv_spec)
    else:
        act_inputs += [pad_act(k), pad_act(v)]
        act_specs += [kv_spec, kv_spec]
    # TODO(synk): for very long S, move the K/V inputs to memory_space=pl.ANY
    # and DMA/LN/project them chunk-wise at s==0 instead of keeping a full-S
    # activation block VMEM-resident.

    def weight_spec(p, single_buf):
        idx = lambda b, s, _nd=p.ndim: (0,) * _nd
        if single_buf:
            try:
                # Constant block -> no point paying 2x VMEM for double buffering.
                return pl.BlockSpec(p.shape, idx,
                                    pipeline_mode=pl.Buffered(buffer_count=1))
            except Exception:
                pass
        return pl.BlockSpec(p.shape, idx)

    out_spec = pl.BlockSpec((1, tS, Op), lambda b, s: (b, s, 0))

    # VMEM scratch: head-major projected K/V caches, filled once per batch.
    scratch = [pltpu.VMEM((num_heads, S_pad, dkp), matmul_dtype),
               pltpu.VMEM((num_heads, S_pad, dkp), matmul_dtype)]

    # ---- generation-aware VMEM budget (includes compiler intermediates) ----
    mm_i = jnp.dtype(matmul_dtype).itemsize
    act_i = jnp.dtype(act_dtype).itemsize
    dkp_l = _round_up(dkp, 128)               # lane-padded head dim in VMEM
    w_bytes = sum(int(p.size) * p.dtype.itemsize for p in ordered)
    act_bytes = 2 * tS * Hp * act_i + (len(act_inputs) - 1) * 2 * S_pad * Hp * act_i
    out_bytes = 2 * tS * Op * 4
    cache_bytes = 2 * num_heads * S_pad * dkp_l * mm_i
    inter_bytes = 4 * (2 * num_heads * tS * tKV           # scores + probs
                       + tS * Fp                           # FFN hidden
                       + 4 * num_heads * tS * dkp_l        # qh / o / acc
                       + 3 * S_pad * Hp)                   # s==0 LN + K/V proj
    est = w_bytes + act_bytes + out_bytes + cache_bytes + inter_bytes

    vmem_limit = None
    if est > (12 << 20):        # v5e's default scoped VMEM limit is 16 MiB
        cap = _vmem_capacity_bytes()
        vmem_limit = min(int(est * 3 // 2), int(cap * 3 // 4))
        # TODO(synk): at production sizes (est near cap) stream w1/w2/wout from
        # HBM (memory_space=pl.ANY + pltpu.emit_pipeline) instead of keeping
        # them VMEM-resident; mandatory headroom on v7x (64 MiB per TC).

    kernel = make_encoder_kernel(mode, num_heads, H, dk, S, S_pad, tKV,
                                 matmul_dtype, gelu_approx)

    def _call(single_buffer_weights):
        w_specs = [weight_spec(p, single_buffer_weights) for p in ordered]
        fn = pl.pallas_call(
            kernel,
            out_shape=jax.ShapeDtypeStruct((B, S_pad, Op), jnp.float32),
            grid_spec=pltpu.PrefetchScalarGridSpec(
                num_scalar_prefetch=0,
                grid=(B, nst),
                in_specs=act_specs + w_specs,
                out_specs=out_spec,
                scratch_shapes=scratch,
            ),
            compiler_params=pltpu.CompilerParams(
                # s axis is 'arbitrary' (K/V cache filled at s == 0, reused by
                # later tiles); batch stays 'parallel' so both v7x TensorCores
                # are used whenever B >= 2.
                dimension_semantics=("parallel", "arbitrary"),
                vmem_limit_bytes=vmem_limit,
            ),
        )
        return fn(*act_inputs, *ordered)

    try:
        out = _call(True)       # single-buffered resident weights
    except Exception:
        out = _call(False)      # fallback if Buffered(1) is unsupported
    return out[:, :S, :out_size]


# ------------------------- pure-JAX reference -------------------------
def encoder_layer_ref(q, k, v, params, num_heads, *, same_qk,
                      matmul_dtype=jnp.float32, gelu_approx=False):
    cdt = matmul_dtype

    def lin(x, w, b):
        return jnp.dot(x.astype(cdt), w.astype(cdt),
                       preferred_element_type=jnp.float32) + b

    def ln(x, w, b):
        mu = jnp.mean(x, axis=-1, keepdims=True)
        var = jnp.mean((x - mu) ** 2, axis=-1, keepdims=True)
        return (x - mu) * jax.lax.rsqrt(var + LN_EPS) * w + b

    def mha(qn, kn, vn):
        B, S, H = qn.shape
        d_k = H // num_heads
        scale = d_k ** (-0.5)
        qp = lin(qn, params["wq"], params["bq"]).reshape(B, -1, num_heads, d_k)
        kp = lin(kn, params["wk"], params["bk"]).reshape(B, -1, num_heads, d_k)
        vp = lin(vn, params["wv"], params["bv"]).reshape(B, -1, num_heads, d_k)
        qp = jnp.transpose(qp, (0, 2, 1, 3)) * scale
        kp = jnp.transpose(kp, (0, 2, 1, 3))
        vp = jnp.transpose(vp, (0, 2, 1, 3))
        s = jnp.einsum("bhqd,bhkd->bhqk", qp.astype(cdt), kp.astype(cdt),
                       preferred_element_type=jnp.float32)
        p = jax.nn.softmax(s, axis=-1)
        o = jnp.einsum("bhqk,bhkd->bhqd", p.astype(cdt), vp.astype(cdt),
                       preferred_element_type=jnp.float32)
        o = jnp.transpose(o, (0, 2, 1, 3)).reshape(B, S, H)
        return lin(o, params["wo"], params["bo"])

    ln1 = lambda x: ln(x, params["ln1_w"], params["ln1_b"])
    ln2 = lambda x: ln(x, params["ln2_w"], params["ln2_b"])

    if same_qk:
        x = q
        y = mha(ln1(x), ln1(x), ln1(x))
        x = x + y
    else:
        x = mha(ln1(q), ln1(k), ln1(v))
    y = ln2(x)
    y = lin(y, params["w1"], params["b1"])
    y = _gelu(y, gelu_approx)
    y = lin(y, params["w2"], params["b2"])
    x = x + y
    return lin(x, params["wout"], params["bout"])


# ---------------------------------- main ----------------------------------
def init_params(key, hidden, ffn, out_size):
    ks = jax.random.split(key, 8)

    def lin(k, fan_in, fan_out):
        bound = 1.0 / math.sqrt(fan_in)
        kw, kb = jax.random.split(k)
        w = jax.random.uniform(kw, (fan_in, fan_out), jnp.float32, -bound, bound)
        b = jax.random.uniform(kb, (fan_out,), jnp.float32, -bound, bound)
        return w, b

    p = {}
    p["ln1_w"] = jnp.ones((hidden,), jnp.float32)
    p["ln1_b"] = jnp.zeros((hidden,), jnp.float32)
    p["ln2_w"] = jnp.ones((hidden,), jnp.float32)
    p["ln2_b"] = jnp.zeros((hidden,), jnp.float32)
    p["wq"], p["bq"] = lin(ks[0], hidden, hidden)
    p["wk"], p["bk"] = lin(ks[1], hidden, hidden)
    p["wv"], p["bv"] = lin(ks[2], hidden, hidden)
    p["wo"], p["bo"] = lin(ks[3], hidden, hidden)
    p["w1"], p["b1"] = lin(ks[4], hidden, ffn)
    p["w2"], p["b2"] = lin(ks[5], ffn, hidden)
    p["wout"], p["bout"] = lin(ks[6], hidden, out_size)
    return p


if __name__ == "__main__":
    B, S, hidden, ffn, out_size, num_heads = 2, 8, 32, 64, 32, 4

    key = jax.random.PRNGKey(0)
    kx, kk, kv, kp = jax.random.split(key, 4)
    x = jax.random.normal(kx, (B, S, hidden), jnp.float32)
    params = init_params(kp, hidden, ffn, out_size)

    # 1) self-attention (q == k), f32 matmuls, jitted wrapper.
    fwd_self = jax.jit(functools.partial(
        encoder_layer_pallas, num_heads=num_heads, same_qk=True,
        matmul_dtype=jnp.float32))
    out = jax.block_until_ready(fwd_self(x, x, x, params))
    ref = encoder_layer_ref(x, x, x, params, num_heads, same_qk=True)
    assert out.shape == (B, S, out_size)
    assert bool(jnp.allclose(out, ref, atol=2e-3, rtol=2e-3)), (
        f"self f32 max abs err {jnp.max(jnp.abs(out - ref))}")

    # 2) cross-attention (q != k), f32 matmuls.
    k2 = jax.random.normal(kk, (B, S, hidden), jnp.float32)
    v2 = jax.random.normal(kv, (B, S, hidden), jnp.float32)
    out = jax.block_until_ready(encoder_layer_pallas(
        x, k2, v2, params, num_heads, same_qk=False, matmul_dtype=jnp.float32))
    ref = encoder_layer_ref(x, k2, v2, params, num_heads, same_qk=False)
    assert bool(jnp.allclose(out, ref, atol=2e-3, rtol=2e-3)), (
        f"cross f32 max abs err {jnp.max(jnp.abs(out - ref))}")

    # 3) longer sequence -> S tiling + K/V cache + bf16 matmuls/activations +
    #    tanh GELU.  Reference is fed the bf16-rounded inputs the kernel sees.
    S2 = 256
    x2 = jax.random.normal(jax.random.fold_in(kx, 1), (B, S2, hidden),
                           jnp.float32)
    out = jax.block_until_ready(encoder_layer_pallas(
        x2, x2, x2, params, num_heads, same_qk=True,
        matmul_dtype=jnp.bfloat16, gelu_approx=True, seq_tile=128, kv_tile=256))
    x2q = x2.astype(jnp.bfloat16).astype(jnp.float32)
    ref = encoder_layer_ref(x2q, x2q, x2q, params, num_heads, same_qk=True,
                            matmul_dtype=jnp.bfloat16, gelu_approx=True)
    assert out.shape == (B, S2, out_size)
    assert bool(jnp.allclose(out, ref, atol=4e-2, rtol=4e-2)), (
        f"self bf16 tiled max abs err {jnp.max(jnp.abs(out - ref))}")

    # 4) flash-style online softmax path (multiple KV chunks), f32.
    out = jax.block_until_ready(encoder_layer_pallas(
        x2, x2, x2, params, num_heads, same_qk=True,
        matmul_dtype=jnp.float32, seq_tile=128, kv_tile=128))
    ref = encoder_layer_ref(x2, x2, x2, params, num_heads, same_qk=True)
    assert bool(jnp.allclose(out, ref, atol=5e-3, rtol=5e-3)), (
        f"self f32 flash max abs err {jnp.max(jnp.abs(out - ref))}")

    # 5) ragged sequence length (host S padding + in-kernel key masking), cross.
    S3 = 36
    x3 = jax.random.normal(jax.random.fold_in(kx, 2), (B, S3, hidden), jnp.float32)
    k3 = jax.random.normal(jax.random.fold_in(kk, 2), (B, S3, hidden), jnp.float32)
    v3 = jax.random.normal(jax.random.fold_in(kv, 2), (B, S3, hidden), jnp.float32)
    out = jax.block_until_ready(encoder_layer_pallas(
        x3, k3, v3, params, num_heads, same_qk=False, matmul_dtype=jnp.float32))
    ref = encoder_layer_ref(x3, k3, v3, params, num_heads, same_qk=False)
    assert out.shape == (B, S3, out_size)
    assert bool(jnp.allclose(out, ref, atol=2e-3, rtol=2e-3)), (
        f"cross f32 padded-S max abs err {jnp.max(jnp.abs(out - ref))}")

    print("KERNEL_OK")
</pallas_src>

<mosaic_0001>
module attributes {stable_mosaic.version = 11 : i64} {
  func.func @kernel(%arg0: i32, %arg1: i32, %arg2: memref<1x8x128xf32, #tpu.memory_space<vmem>>, %arg3: memref<1x8x128xf32, #tpu.memory_space<vmem>>, %arg4: memref<1x128xf32, #tpu.memory_space<vmem>>, %arg5: memref<1x128xf32, #tpu.memory_space<vmem>>, %arg6: memref<128x128xf32, #tpu.memory_space<vmem>>, %arg7: memref<1x128xf32, #tpu.memory_space<vmem>>, %arg8: memref<128x128xf32, #tpu.memory_space<vmem>>, %arg9: memref<1x128xf32, #tpu.memory_space<vmem>>, %arg10: memref<128x128xf32, #tpu.memory_space<vmem>>, %arg11: memref<1x128xf32, #tpu.memory_space<vmem>>, %arg12: memref<4x32x128xf32, #tpu.memory_space<vmem>>, %arg13: memref<1x128xf32, #tpu.memory_space<vmem>>, %arg14: memref<1x128xf32, #tpu.memory_space<vmem>>, %arg15: memref<1x128xf32, #tpu.memory_space<vmem>>, %arg16: memref<128x128xf32, #tpu.memory_space<vmem>>, %arg17: memref<1x128xf32, #tpu.memory_space<vmem>>, %arg18: memref<128x128xf32, #tpu.memory_space<vmem>>, %arg19: memref<1x128xf32, #tpu.memory_space<vmem>>, %arg20: memref<128x128xf32, #tpu.memory_space<vmem>>, %arg21: memref<1x128xf32, #tpu.memory_space<vmem>>, %arg22: memref<1x8x128xf32, #tpu.memory_space<vmem>>, %arg23: memref<4x8x32xf32, #tpu.memory_space<vmem>>, %arg24: memref<4x8x32xf32, #tpu.memory_space<vmem>>) attributes {dimension_semantics = [#tpu.dimension_semantics<parallel>, #tpu.dimension_semantics<arbitrary>], iteration_bounds = array<i64: 2, 1>, scalar_prefetch = 0 : i64, scratch_operands = 2 : i64, tpu.core_type = #tpu.core_type<tc>, window_params = [{transform_indices = @transform_0, window_bounds = array<i64: 1, 8, 128>}, {transform_indices = @transform_1, window_bounds = array<i64: 1, 8, 128>}, {pipeline_mode = #tpu.pipeline_mode<synchronous>, transform_indices = @transform_2, window_bounds = array<i64: 1, 128>}, {pipeline_mode = #tpu.pipeline_mode<synchronous>, transform_indices = @transform_3, window_bounds = array<i64: 1, 128>}, {pipeline_mode = #tpu.pipeline_mode<synchronous>, transform_indices = @transform_4, window_bounds = array<i64: 128, 128>}, {pipeline_mode = #tpu.pipeline_mode<synchronous>, transform_indices = @transform_5, window_bounds = array<i64: 1, 128>}, {pipeline_mode = #tpu.pipeline_mode<synchronous>, transform_indices = @transform_6, window_bounds = array<i64: 128, 128>}, {pipeline_mode = #tpu.pipeline_mode<synchronous>, transform_indices = @transform_7, window_bounds = array<i64: 1, 128>}, {pipeline_mode = #tpu.pipeline_mode<synchronous>, transform_indices = @transform_8, window_bounds = array<i64: 128, 128>}, {pipeline_mode = #tpu.pipeline_mode<synchronous>, transform_indices = @transform_9, window_bounds = array<i64: 1, 128>}, {pipeline_mode = #tpu.pipeline_mode<synchronous>, transform_indices = @transform_10, window_bounds = array<i64: 4, 32, 128>}, {pipeline_mode = #tpu.pipeline_mode<synchronous>, transform_indices = @transform_11, window_bounds = array<i64: 1, 128>}, {pipeline_mode = #tpu.pipeline_mode<synchronous>, transform_indices = @transform_12, window_bounds = array<i64: 1, 128>}, {pipeline_mode = #tpu.pipeline_mode<synchronous>, transform_indices = @transform_13, window_bounds = array<i64: 1, 128>}, {pipeline_mode = #tpu.pipeline_mode<synchronous>, transform_indices = @transform_14, window_bounds = array<i64: 128, 128>}, {pipeline_mode = #tpu.pipeline_mode<synchronous>, transform_indices = @transform_15, window_bounds = array<i64: 1, 128>}, {pipeline_mode = #tpu.pipeline_mode<synchronous>, transform_indices = @transform_16, window_bounds = array<i64: 128, 128>}, {pipeline_mode = #tpu.pipeline_mode<synchronous>, transform_indices = @transform_17, window_bounds = array<i64: 1, 128>}, {pipeline_mode = #tpu.pipeline_mode<synchronous>, transform_indices = @transform_18, window_bounds = array<i64: 128, 128>}, {pipeline_mode = #tpu.pipeline_mode<synchronous>, transform_indices = @transform_19, window_bounds = array<i64: 1, 128>}, {transform_indices = @transform_20, window_bounds = array<i64: 1, 8, 128>}]} {
    %0 = tpu.iota {dimensions = array<i32: 1>} : vector<1x128xi32>
    %c32_i32 = arith.constant 32 : i32
    %1 = vector.broadcast %c32_i32 : i32 to vector<1x128xi32>
    %2 = arith.cmpi slt, %0, %1 : vector<1x128xi32>
    %3 = arith.extui %2 : vector<1x128xi1> to vector<1x128xi32>
    %4 = arith.sitofp %3 : vector<1x128xi32> to vector<1x128xf32>
    %c0_i32 = arith.constant 0 : i32
    %5 = arith.cmpi eq, %arg1, %c0_i32 : i32
    %6 = arith.extui %5 : i1 to i32
    %c0_i32_0 = arith.constant 0 : i32
    %7 = arith.cmpi ne, %6, %c0_i32_0 : i32
    scf.if %7 {
      %c0_64 = arith.constant 0 : index
      %c0_65 = arith.constant 0 : index
      %c0_66 = arith.constant 0 : index
      %115 = vector.load %arg3[%c0_64, %c0_65, %c0_66] : memref<1x8x128xf32, #tpu.memory_space<vmem>>, vector<1x8x128xf32>
      %116 = vector.shape_cast %115 : vector<1x8x128xf32> to vector<8x128xf32>
      %cst_67 = arith.constant dense<0.000000e+00> : vector<8xf32>
      %117 = vector.multi_reduction <add>, %116, %cst_67 [1] : vector<8x128xf32> to vector<8xf32>
      %118 = vector.shape_cast %117 : vector<8xf32> to vector<8x1xf32>
      %cst_68 = arith.constant 3.125000e-02 : f32
      %119 = vector.broadcast %cst_68 : f32 to vector<8x1xf32>
      %120 = arith.mulf %118, %119 : vector<8x1xf32>
      %121 = vector.broadcast %120 : vector<8x1xf32> to vector<8x128xf32>
      %122 = arith.subf %116, %121 : vector<8x128xf32>
      %123 = vector.broadcast %4 : vector<1x128xf32> to vector<8x128xf32>
      %124 = arith.mulf %122, %123 : vector<8x128xf32>
      %125 = arith.mulf %124, %124 : vector<8x128xf32>
      %cst_69 = arith.constant dense<0.000000e+00> : vector<8xf32>
      %126 = vector.multi_reduction <add>, %125, %cst_69 [1] : vector<8x128xf32> to vector<8xf32>
      %127 = vector.shape_cast %126 : vector<8xf32> to vector<8x1xf32>
      %cst_70 = arith.constant 3.125000e-02 : f32
      %128 = vector.broadcast %cst_70 : f32 to vector<8x1xf32>
      %129 = arith.mulf %127, %128 : vector<8x1xf32>
      %cst_71 = arith.constant 9.99999974E-6 : f32
      %130 = vector.broadcast %cst_71 : f32 to vector<8x1xf32>
      %131 = arith.addf %129, %130 : vector<8x1xf32>
      %132 = math.rsqrt %131 : vector<8x1xf32>
      %133 = vector.broadcast %132 : vector<8x1xf32> to vector<8x128xf32>
      %134 = arith.mulf %124, %133 : vector<8x128xf32>
      %c0_72 = arith.constant 0 : index
      %c0_73 = arith.constant 0 : index
      %135 = vector.load %arg4[%c0_72, %c0_73] : memref<1x128xf32, #tpu.memory_space<vmem>>, vector<1x128xf32>
      %136 = vector.broadcast %135 : vector<1x128xf32> to vector<8x128xf32>
      %137 = arith.mulf %134, %136 : vector<8x128xf32>
      %c0_74 = arith.constant 0 : index
      %c0_75 = arith.constant 0 : index
      %138 = vector.load %arg5[%c0_74, %c0_75] : memref<1x128xf32, #tpu.memory_space<vmem>>, vector<1x128xf32>
      %139 = vector.broadcast %138 : vector<1x128xf32> to vector<8x128xf32>
      %140 = arith.addf %137, %139 : vector<8x128xf32>
      %c0_76 = arith.constant 0 : index
      %c0_77 = arith.constant 0 : index
      %141 = vector.load %arg8[%c0_76, %c0_77] : memref<128x128xf32, #tpu.memory_space<vmem>>, vector<128x128xf32>
      %cst_78 = arith.constant dense<0.000000e+00> : vector<8x128xf32>
      %142 = tpu.matmul %140, %141, %cst_78 {dimension_numbers = #tpu.dot_dimension_numbers<[1], [0], [0], [1], [0, 0, 1, 1], [], []>} : vector<8x128xf32>, vector<128x128xf32>, vector<8x128xf32> -> vector<8x128xf32>
      %c0_79 = arith.constant 0 : index
      %c0_80 = arith.constant 0 : index
      %143 = vector.load %arg9[%c0_79, %c0_80] : memref<1x128xf32, #tpu.memory_space<vmem>>, vector<1x128xf32>
      %144 = vector.broadcast %143 : vector<1x128xf32> to vector<8x128xf32>
      %145 = arith.addf %142, %144 : vector<8x128xf32>
      %c0_81 = arith.constant 0 : index
      %c0_82 = arith.constant 0 : index
      %146 = vector.load %arg10[%c0_81, %c0_82] : memref<128x128xf32, #tpu.memory_space<vmem>>, vector<128x128xf32>
      %cst_83 = arith.constant dense<0.000000e+00> : vector<8x128xf32>
      %147 = tpu.matmul %140, %146, %cst_83 {dimension_numbers = #tpu.dot_dimension_numbers<[1], [0], [0], [1], [0, 0, 1, 1], [], []>} : vector<8x128xf32>, vector<128x128xf32>, vector<8x128xf32> -> vector<8x128xf32>
      %c0_84 = arith.constant 0 : index
      %c0_85 = arith.constant 0 : index
      %148 = vector.load %arg11[%c0_84, %c0_85] : memref<1x128xf32, #tpu.memory_space<vmem>>, vector<1x128xf32>
      %149 = vector.broadcast %148 : vector<1x128xf32> to vector<8x128xf32>
      %150 = arith.addf %147, %149 : vector<8x128xf32>
      %151 = vector.shape_cast %145 : vector<8x128xf32> to vector<8x4x32xf32>
      %152 = tpu.transpose %151, [1, 0, 2] : vector<8x4x32xf32> -> vector<4x8x32xf32>
      %c0_86 = arith.constant 0 : index
      %c0_87 = arith.constant 0 : index
      %c0_88 = arith.constant 0 : index
      %153 = vector.load %arg23[%c0_86, %c0_87, %c0_88] : memref<4x8x32xf32, #tpu.memory_space<vmem>>, vector<4x8x32xf32>
      tpu.vector_store %arg23[%c0_86, %c0_87, %c0_88], %152 {strides = array<i32>} : memref<4x8x32xf32, #tpu.memory_space<vmem>>, vector<4x8x32xf32>,
      %154 = vector.shape_cast %150 : vector<8x128xf32> to vector<8x4x32xf32>
      %155 = tpu.transpose %154, [1, 0, 2] : vector<8x4x32xf32> -> vector<4x8x32xf32>
      %c0_89 = arith.constant 0 : index
      %c0_90 = arith.constant 0 : index
      %c0_91 = arith.constant 0 : index
      %156 = vector.load %arg24[%c0_89, %c0_90, %c0_91] : memref<4x8x32xf32, #tpu.memory_space<vmem>>, vector<4x8x32xf32>
      tpu.vector_store %arg24[%c0_89, %c0_90, %c0_91], %155 {strides = array<i32>} : memref<4x8x32xf32, #tpu.memory_space<vmem>>, vector<4x8x32xf32>,
    } else {
    }
    %c0 = arith.constant 0 : index
    %c0_1 = arith.constant 0 : index
    %c0_2 = arith.constant 0 : index
    %8 = vector.load %arg2[%c0, %c0_1, %c0_2] : memref<1x8x128xf32, #tpu.memory_space<vmem>>, vector<1x8x128xf32>
    %9 = vector.shape_cast %8 : vector<1x8x128xf32> to vector<8x128xf32>
    %cst = arith.constant dense<0.000000e+00> : vector<8xf32>
    %10 = vector.multi_reduction <add>, %9, %cst [1] : vector<8x128xf32> to vector<8xf32>
    %11 = vector.shape_cast %10 : vector<8xf32> to vector<8x1xf32>
    %cst_3 = arith.constant 3.125000e-02 : f32
    %12 = vector.broadcast %cst_3 : f32 to vector<8x1xf32>
    %13 = arith.mulf %11, %12 : vector<8x1xf32>
    %14 = vector.broadcast %13 : vector<8x1xf32> to vector<8x128xf32>
    %15 = arith.subf %9, %14 : vector<8x128xf32>
    %16 = vector.broadcast %4 : vector<1x128xf32> to vector<8x128xf32>
    %17 = arith.mulf %15, %16 : vector<8x128xf32>
    %18 = arith.mulf %17, %17 : vector<8x128xf32>
    %cst_4 = arith.constant dense<0.000000e+00> : vector<8xf32>
    %19 = vector.multi_reduction <add>, %18, %cst_4 [1] : vector<8x128xf32> to vector<8xf32>
    %20 = vector.shape_cast %19 : vector<8xf32> to vector<8x1xf32>
    %cst_5 = arith.constant 3.125000e-02 : f32
    %21 = vector.broadcast %cst_5 : f32 to vector<8x1xf32>
    %22 = arith.mulf %20, %21 : vector<8x1xf32>
    %cst_6 = arith.constant 9.99999974E-6 : f32
    %23 = vector.broadcast %cst_6 : f32 to vector<8x1xf32>
    %24 = arith.addf %22, %23 : vector<8x1xf32>
    %25 = math.rsqrt %24 : vector<8x1xf32>
    %26 = vector.broadcast %25 : vector<8x1xf32> to vector<8x128xf32>
    %27 = arith.mulf %17, %26 : vector<8x128xf32>
    %c0_7 = arith.constant 0 : index
    %c0_8 = arith.constant 0 : index
    %28 = vector.load %arg4[%c0_7, %c0_8] : memref<1x128xf32, #tpu.memory_space<vmem>>, vector<1x128xf32>
    %29 = vector.broadcast %28 : vector<1x128xf32> to vector<8x128xf32>
    %30 = arith.mulf %27, %29 : vector<8x128xf32>
    %c0_9 = arith.constant 0 : index
    %c0_10 = arith.constant 0 : index
    %31 = vector.load %arg5[%c0_9, %c0_10] : memref<1x128xf32, #tpu.memory_space<vmem>>, vector<1x128xf32>
    %32 = vector.broadcast %31 : vector<1x128xf32> to vector<8x128xf32>
    %33 = arith.addf %30, %32 : vector<8x128xf32>
    %c0_11 = arith.constant 0 : index
    %c0_12 = arith.constant 0 : index
    %34 = vector.load %arg6[%c0_11, %c0_12] : memref<128x128xf32, #tpu.memory_space<vmem>>, vector<128x128xf32>
    %cst_13 = arith.constant dense<0.000000e+00> : vector<8x128xf32>
    %35 = tpu.matmul %33, %34, %cst_13 {dimension_numbers = #tpu.dot_dimension_numbers<[1], [0], [0], [1], [0, 0, 1, 1], [], []>} : vector<8x128xf32>, vector<128x128xf32>, vector<8x128xf32> -> vector<8x128xf32>
    %c0_14 = arith.constant 0 : index
    %c0_15 = arith.constant 0 : index
    %36 = vector.load %arg7[%c0_14, %c0_15] : memref<1x128xf32, #tpu.memory_space<vmem>>, vector<1x128xf32>
    %37 = vector.broadcast %36 : vector<1x128xf32> to vector<8x128xf32>
    %38 = arith.addf %35, %37 : vector<8x128xf32>
    %cst_16 = arith.constant 0.353553385 : f32
    %39 = vector.broadcast %cst_16 : f32 to vector<8x128xf32>
    %40 = arith.mulf %38, %39 : vector<8x128xf32>
    %41 = vector.shape_cast %40 : vector<8x128xf32> to vector<8x4x32xf32>
    %42 = tpu.transpose %41, [1, 0, 2] : vector<8x4x32xf32> -> vector<4x8x32xf32>
    %c0_17 = arith.constant 0 : index
    %c0_18 = arith.constant 0 : index
    %c0_19 = arith.constant 0 : index
    %43 = vector.load %arg23[%c0_17, %c0_18, %c0_19] : memref<4x8x32xf32, #tpu.memory_space<vmem>>, vector<4x8x32xf32>
    %c0_20 = arith.constant 0 : index
    %c0_21 = arith.constant 0 : index
    %c0_22 = arith.constant 0 : index
    %44 = vector.load %arg24[%c0_20, %c0_21, %c0_22] : memref<4x8x32xf32, #tpu.memory_space<vmem>>, vector<4x8x32xf32>
    "tpu.trace_start"() <{level = 10 : i32, message = "hqd,hkd->hqk"}> : () -> ()
    %cst_23 = arith.constant dense<0.000000e+00> : vector<4x8x8xf32>
    %45 = tpu.matmul %42, %43, %cst_23 {dimension_numbers = #tpu.dot_dimension_numbers<[2], [2], [1], [1], [0, 0, 0, 1, 1, 1], [0], [0]>} : vector<4x8x32xf32>, vector<4x8x32xf32>, vector<4x8x8xf32> -> vector<4x8x8xf32>
    "tpu.trace_stop"() : () -> ()
    %cst_24 = arith.constant dense<0xFF800000> : vector<4x8xf32>
    %46 = vector.multi_reduction <maximumf>, %45, %cst_24 [2] : vector<4x8x8xf32> to vector<4x8xf32>
    %47 = vector.shape_cast %46 : vector<4x8xf32> to vector<4x8x1xf32>
    %48 = vector.broadcast %47 : vector<4x8x1xf32> to vector<4x8x8xf32>
    %49 = arith.subf %45, %48 : vector<4x8x8xf32>
    %50 = math.exp %49 : vector<4x8x8xf32>
    %cst_25 = arith.constant dense<0.000000e+00> : vector<4x8xf32>
    %51 = vector.multi_reduction <add>, %50, %cst_25 [2] : vector<4x8x8xf32> to vector<4x8xf32>
    %52 = vector.shape_cast %51 : vector<4x8xf32> to vector<4x8x1xf32>
    %53 = tpu.reciprocal %52 {approx = true} : vector<4x8x1xf32> -> vector<4x8x1xf32>
    %54 = vector.broadcast %53 : vector<4x8x1xf32> to vector<4x8x8xf32>
    %55 = arith.mulf %50, %54 : vector<4x8x8xf32>
    "tpu.trace_start"() <{level = 10 : i32, message = "hqk,hkd->hqd"}> : () -> ()
    %cst_26 = arith.constant dense<0.000000e+00> : vector<4x8x32xf32>
    %56 = tpu.matmul %55, %44, %cst_26 {dimension_numbers = #tpu.dot_dimension_numbers<[2], [1], [1], [2], [0, 0, 0, 1, 1, 2], [0], [0]>} : vector<4x8x8xf32>, vector<4x8x32xf32>, vector<4x8x32xf32> -> vector<4x8x32xf32>
    "tpu.trace_stop"() : () -> ()
    %c0_27 = arith.constant 0 : index
    %c0_28 = arith.constant 0 : index
    %c0_29 = arith.constant 0 : index
    %57 = vector.load %arg12[%c0_27, %c0_28, %c0_29] : memref<4x32x128xf32, #tpu.memory_space<vmem>>, vector<4x32x128xf32>
    "tpu.trace_start"() <{level = 10 : i32, message = "hqd,hdo->hqo"}> : () -> ()
    %cst_30 = arith.constant dense<0.000000e+00> : vector<4x8x128xf32>
    %58 = tpu.matmul %56, %57, %cst_30 {dimension_numbers = #tpu.dot_dimension_numbers<[2], [1], [1], [2], [0, 0, 0, 1, 1, 2], [0], [0]>} : vector<4x8x32xf32>, vector<4x32x128xf32>, vector<4x8x128xf32> -> vector<4x8x128xf32>
    "tpu.trace_stop"() : () -> ()
    %cst_31 = arith.constant dense<0.000000e+00> : vector<8x128xf32>
    %59 = vector.multi_reduction <add>, %58, %cst_31 [0] : vector<4x8x128xf32> to vector<8x128xf32>
    %c0_32 = arith.constant 0 : index
    %c0_33 = arith.constant 0 : index
    %60 = vector.load %arg13[%c0_32, %c0_33] : memref<1x128xf32, #tpu.memory_space<vmem>>, vector<1x128xf32>
    %61 = vector.broadcast %60 : vector<1x128xf32> to vector<8x128xf32>
    %62 = arith.addf %59, %61 : vector<8x128xf32>
    %63 = arith.addf %9, %62 : vector<8x128xf32>
    %cst_34 = arith.constant dense<0.000000e+00> : vector<8xf32>
    %64 = vector.multi_reduction <add>, %63, %cst_34 [1] : vector<8x128xf32> to vector<8xf32>
    %65 = vector.shape_cast %64 : vector<8xf32> to vector<8x1xf32>
    %cst_35 = arith.constant 3.125000e-02 : f32
    %66 = vector.broadcast %cst_35 : f32 to vector<8x1xf32>
    %67 = arith.mulf %65, %66 : vector<8x1xf32>
    %68 = vector.broadcast %67 : vector<8x1xf32> to vector<8x128xf32>
    %69 = arith.subf %63, %68 : vector<8x128xf32>
    %70 = vector.broadcast %4 : vector<1x128xf32> to vector<8x128xf32>
    %71 = arith.mulf %69, %70 : vector<8x128xf32>
    %72 = arith.mulf %71, %71 : vector<8x128xf32>
    %cst_36 = arith.constant dense<0.000000e+00> : vector<8xf32>
    %73 = vector.multi_reduction <add>, %72, %cst_36 [1] : vector<8x128xf32> to vector<8xf32>
    %74 = vector.shape_cast %73 : vector<8xf32> to vector<8x1xf32>
    %cst_37 = arith.constant 3.125000e-02 : f32
    %75 = vector.broadcast %cst_37 : f32 to vector<8x1xf32>
    %76 = arith.mulf %74, %75 : vector<8x1xf32>
    %cst_38 = arith.constant 9.99999974E-6 : f32
    %77 = vector.broadcast %cst_38 : f32 to vector<8x1xf32>
    %78 = arith.addf %76, %77 : vector<8x1xf32>
    %79 = math.rsqrt %78 : vector<8x1xf32>
    %80 = vector.broadcast %79 : vector<8x1xf32> to vector<8x128xf32>
    %81 = arith.mulf %71, %80 : vector<8x128xf32>
    %c0_39 = arith.constant 0 : index
    %c0_40 = arith.constant 0 : index
    %82 = vector.load %arg14[%c0_39, %c0_40] : memref<1x128xf32, #tpu.memory_space<vmem>>, vector<1x128xf32>
    %83 = vector.broadcast %82 : vector<1x128xf32> to vector<8x128xf32>
    %84 = arith.mulf %81, %83 : vector<8x128xf32>
    %c0_41 = arith.constant 0 : index
    %c0_42 = arith.constant 0 : index
    %85 = vector.load %arg15[%c0_41, %c0_42] : memref<1x128xf32, #tpu.memory_space<vmem>>, vector<1x128xf32>
    %86 = vector.broadcast %85 : vector<1x128xf32> to vector<8x128xf32>
    %87 = arith.addf %84, %86 : vector<8x128xf32>
    %c0_43 = arith.constant 0 : index
    %c0_44 = arith.constant 0 : index
    %88 = vector.load %arg16[%c0_43, %c0_44] : memref<128x128xf32, #tpu.memory_space<vmem>>, vector<128x128xf32>
    %cst_45 = arith.constant dense<0.000000e+00> : vector<8x128xf32>
    %89 = tpu.matmul %87, %88, %cst_45 {dimension_numbers = #tpu.dot_dimension_numbers<[1], [0], [0], [1], [0, 0, 1, 1], [], []>} : vector<8x128xf32>, vector<128x128xf32>, vector<8x128xf32> -> vector<8x128xf32>
    %c0_46 = arith.constant 0 : index
    %c0_47 = arith.constant 0 : index
    %90 = vector.load %arg17[%c0_46, %c0_47] : memref<1x128xf32, #tpu.memory_space<vmem>>, vector<1x128xf32>
    %91 = vector.broadcast %90 : vector<1x128xf32> to vector<8x128xf32>
    %92 = arith.addf %89, %91 : vector<8x128xf32>
    %cst_48 = arith.constant 5.000000e-01 : f32
    %93 = vector.broadcast %cst_48 : f32 to vector<8x128xf32>
    %94 = arith.mulf %93, %92 : vector<8x128xf32>
    %cst_49 = arith.constant 0.707106769 : f32
    %95 = vector.broadcast %cst_49 : f32 to vector<8x128xf32>
    %96 = arith.mulf %92, %95 : vector<8x128xf32>
    %97 = math.erf %96 : vector<8x128xf32>
    %cst_50 = arith.constant 1.000000e+00 : f32
    %98 = vector.broadcast %cst_50 : f32 to vector<8x128xf32>
    %99 = arith.addf %98, %97 : vector<8x128xf32>
    %100 = arith.mulf %94, %99 : vector<8x128xf32>
    %c0_51 = arith.constant 0 : index
    %c0_52 = arith.constant 0 : index
    %101 = vector.load %arg18[%c0_51, %c0_52] : memref<128x128xf32, #tpu.memory_space<vmem>>, vector<128x128xf32>
    %cst_53 = arith.constant dense<0.000000e+00> : vector<8x128xf32>
    %102 = tpu.matmul %100, %101, %cst_53 {dimension_numbers = #tpu.dot_dimension_numbers<[1], [0], [0], [1], [0, 0, 1, 1], [], []>} : vector<8x128xf32>, vector<128x128xf32>, vector<8x128xf32> -> vector<8x128xf32>
    %c0_54 = arith.constant 0 : index
    %c0_55 = arith.constant 0 : index
    %103 = vector.load %arg19[%c0_54, %c0_55] : memref<1x128xf32, #tpu.memory_space<vmem>>, vector<1x128xf32>
    %104 = vector.broadcast %103 : vector<1x128xf32> to vector<8x128xf32>
    %105 = arith.addf %102, %104 : vector<8x128xf32>
    %106 = arith.addf %63, %105 : vector<8x128xf32>
    %c0_56 = arith.constant 0 : index
    %c0_57 = arith.constant 0 : index
    %107 = vector.load %arg20[%c0_56, %c0_57] : memref<128x128xf32, #tpu.memory_space<vmem>>, vector<128x128xf32>
    %cst_58 = arith.constant dense<0.000000e+00> : vector<8x128xf32>
    %108 = tpu.matmul %106, %107, %cst_58 {dimension_numbers = #tpu.dot_dimension_numbers<[1], [0], [0], [1], [0, 0, 1, 1], [], []>} : vector<8x128xf32>, vector<128x128xf32>, vector<8x128xf32> -> vector<8x128xf32>
    %c0_59 = arith.constant 0 : index
    %c0_60 = arith.constant 0 : index
    %109 = vector.load %arg21[%c0_59, %c0_60] : memref<1x128xf32, #tpu.memory_space<vmem>>, vector<1x128xf32>
    %110 = vector.broadcast %109 : vector<1x128xf32> to vector<8x128xf32>
    %111 = arith.addf %108, %110 : vector<8x128xf32>
    %c0_61 = arith.constant 0 : index
    %c0_62 = arith.constant 0 : index
    %c0_63 = arith.constant 0 : index
    %112 = vector.load %arg22[%c0_61, %c0_62, %c0_63] : memref<1x8x128xf32, #tpu.memory_space<vmem>>, vector<1x8x128xf32>
    %113 = vector.shape_cast %112 : vector<1x8x128xf32> to vector<8x128xf32>
    %114 = vector.shape_cast %111 : vector<8x128xf32> to vector<1x8x128xf32>
    tpu.vector_store %arg22[%c0_61, %c0_62, %c0_63], %114 {strides = array<i32>} : memref<1x8x128xf32, #tpu.memory_space<vmem>>, vector<1x8x128xf32>,
    return
  }
  func.func @transform_0(%arg0: i32, %arg1: i32) -> (i32, i32, i32) {
    %c0_i32 = arith.constant 0 : i32
    %c0_i32_0 = arith.constant 0 : i32
    return %arg0, %arg1, %c0_i32 : i32, i32, i32
  }
  func.func @transform_1(%arg0: i32, %arg1: i32) -> (i32, i32, i32) {
    %c0_i32 = arith.constant 0 : i32
    %c0_i32_0 = arith.constant 0 : i32
    %c0_i32_1 = arith.constant 0 : i32
    return %arg0, %c0_i32, %c0_i32_0 : i32, i32, i32
  }
  func.func @transform_2(%arg0: i32, %arg1: i32) -> (i32, i32) {
    %c0_i32 = arith.constant 0 : i32
    %c0_i32_0 = arith.constant 0 : i32
    %c0_i32_1 = arith.constant 0 : i32
    return %c0_i32, %c0_i32_0 : i32, i32
  }
  func.func @transform_3(%arg0: i32, %arg1: i32) -> (i32, i32) {
    %c0_i32 = arith.constant 0 : i32
    %c0_i32_0 = arith.constant 0 : i32
    %c0_i32_1 = arith.constant 0 : i32
    return %c0_i32, %c0_i32_0 : i32, i32
  }
  func.func @transform_4(%arg0: i32, %arg1: i32) -> (i32, i32) {
    %c0_i32 = arith.constant 0 : i32
    %c0_i32_0 = arith.constant 0 : i32
    %c0_i32_1 = arith.constant 0 : i32
    return %c0_i32, %c0_i32_0 : i32, i32
  }
  func.func @transform_5(%arg0: i32, %arg1: i32) -> (i32, i32) {
    %c0_i32 = arith.constant 0 : i32
    %c0_i32_0 = arith.constant 0 : i32
    %c0_i32_1 = arith.constant 0 : i32
    return %c0_i32, %c0_i32_0 : i32, i32
  }
  func.func @transform_6(%arg0: i32, %arg1: i32) -> (i32, i32) {
    %c0_i32 = arith.constant 0 : i32
    %c0_i32_0 = arith.constant 0 : i32
    %c0_i32_1 = arith.constant 0 : i32
    return %c0_i32, %c0_i32_0 : i32, i32
  }
  func.func @transform_7(%arg0: i32, %arg1: i32) -> (i32, i32) {
    %c0_i32 = arith.constant 0 : i32
    %c0_i32_0 = arith.constant 0 : i32
    %c0_i32_1 = arith.constant 0 : i32
    return %c0_i32, %c0_i32_0 : i32, i32
  }
  func.func @transform_8(%arg0: i32, %arg1: i32) -> (i32, i32) {
    %c0_i32 = arith.constant 0 : i32
    %c0_i32_0 = arith.constant 0 : i32
    %c0_i32_1 = arith.constant 0 : i32
    return %c0_i32, %c0_i32_0 : i32, i32
  }
  func.func @transform_9(%arg0: i32, %arg1: i32) -> (i32, i32) {
    %c0_i32 = arith.constant 0 : i32
    %c0_i32_0 = arith.constant 0 : i32
    %c0_i32_1 = arith.constant 0 : i32
    return %c0_i32, %c0_i32_0 : i32, i32
  }
  func.func @transform_10(%arg0: i32, %arg1: i32) -> (i32, i32, i32) {
    %c0_i32 = arith.constant 0 : i32
    %c0_i32_0 = arith.constant 0 : i32
    %c0_i32_1 = arith.constant 0 : i32
    %c0_i32_2 = arith.constant 0 : i32
    return %c0_i32, %c0_i32_0, %c0_i32_1 : i32, i32, i32
  }
  func.func @transform_11(%arg0: i32, %arg1: i32) -> (i32, i32) {
    %c0_i32 = arith.constant 0 : i32
    %c0_i32_0 = arith.constant 0 : i32
    %c0_i32_1 = arith.constant 0 : i32
    return %c0_i32, %c0_i32_0 : i32, i32
  }
  func.func @transform_12(%arg0: i32, %arg1: i32) -> (i32, i32) {
    %c0_i32 = arith.constant 0 : i32
    %c0_i32_0 = arith.constant 0 : i32
    %c0_i32_1 = arith.constant 0 : i32
    return %c0_i32, %c0_i32_0 : i32, i32
  }
  func.func @transform_13(%arg0: i32, %arg1: i32) -> (i32, i32) {
    %c0_i32 = arith.constant 0 : i32
    %c0_i32_0 = arith.constant 0 : i32
    %c0_i32_1 = arith.constant 0 : i32
    return %c0_i32, %c0_i32_0 : i32, i32
  }
  func.func @transform_14(%arg0: i32, %arg1: i32) -> (i32, i32) {
    %c0_i32 = arith.constant 0 : i32
    %c0_i32_0 = arith.constant 0 : i32
    %c0_i32_1 = arith.constant 0 : i32
    return %c0_i32, %c0_i32_0 : i32, i32
  }
  func.func @transform_15(%arg0: i32, %arg1: i32) -> (i32, i32) {
    %c0_i32 = arith.constant 0 : i32
    %c0_i32_0 = arith.constant 0 : i32
    %c0_i32_1 = arith.constant 0 : i32
    return %c0_i32, %c0_i32_0 : i32, i32
  }
  func.func @transform_16(%arg0: i32, %arg1: i32) -> (i32, i32) {
    %c0_i32 = arith.constant 0 : i32
    %c0_i32_0 = arith.constant 0 : i32
    %c0_i32_1 = arith.constant 0 : i32
    return %c0_i32, %c0_i32_0 : i32, i32
  }
  func.func @transform_17(%arg0: i32, %arg1: i32) -> (i32, i32) {
    %c0_i32 = arith.constant 0 : i32
    %c0_i32_0 = arith.constant 0 : i32
    %c0_i32_1 = arith.constant 0 : i32
    return %c0_i32, %c0_i32_0 : i32, i32
  }
  func.func @transform_18(%arg0: i32, %arg1: i32) -> (i32, i32) {
    %c0_i32 = arith.constant 0 : i32
    %c0_i32_0 = arith.constant 0 : i32
    %c0_i32_1 = arith.constant 0 : i32
    return %c0_i32, %c0_i32_0 : i32, i32
  }
  func.func @transform_19(%arg0: i32, %arg1: i32) -> (i32, i32) {
    %c0_i32 = arith.constant 0 : i32
    %c0_i32_0 = arith.constant 0 : i32
    %c0_i32_1 = arith.constant 0 : i32
    return %c0_i32, %c0_i32_0 : i32, i32
  }
  func.func @transform_20(%arg0: i32, %arg1: i32) -> (i32, i32, i32) {
    %c0_i32 = arith.constant 0 : i32
    %c0_i32_0 = arith.constant 0 : i32
    return %arg0, %arg1, %c0_i32 : i32, i32, i32
  }
}

</mosaic_0001>

<bundles_post_ra>
// kernel: encoder_layer_pallas.1
= control target key start
LH: loop header
LB: loop body
LE: loop exit
PB: predicated region body
PF: predicated region fallthrough
CT: control target
= control target key end

     0   :  { %s4380_s0 = inlined_call_operand.vmem [shape: f32[2,8,128], index: 0, kind: input, shape index: {}, may-alias: {0,1}]   ;;  %s4381_s1 = inlined_call_operand.vmem [shape: f32[2,8,128], index: 1, kind: input, shape index: {}, may-alias: {0,1}]   ;;  %s4382_s2 = inlined_call_operand.vmem [shape: f32[1,128], index: 2, kind: input, shape index: {}]   ;;  %s4383_s3 = inlined_call_operand.vmem [shape: f32[1,128], index: 3, kind: input, shape index: {}]   ;;  %s4384_s4 = inlined_call_operand.vmem [shape: f32[128,128], index: 4, kind: input, shape index: {}]   ;;  %s4385_s5 = inlined_call_operand.vmem [shape: f32[1,128], index: 5, kind: input, shape index: {}]   ;;  %s4386_s6 = inlined_call_operand.vmem [shape: f32[128,128], index: 6, kind: input, shape index: {}]   ;;  %s4387_s7 = inlined_call_operand.vmem [shape: f32[1,128], index: 7, kind: input, shape index: {}]   ;;  %s4388_s8 = inlined_call_operand.vmem [shape: f32[128,128], index: 8, kind: input, shape index: {}]   ;;  %s4389_s9 = inlined_call_operand.vmem [shape: f32[1,128], index: 9, kind: input, shape index: {}]   ;;  %s4390_s10 = inlined_call_operand.vmem [shape: f32[4,32,128], index: 10, kind: input, shape index: {}]   ;;  %s4391_s11 = inlined_call_operand.vmem [shape: f32[1,128], index: 11, kind: input, shape index: {}]   ;;  %s4392_s12 = inlined_call_operand.vmem [shape: f32[1,128], index: 12, kind: input, shape index: {}]   ;;  %s4393_s13 = inlined_call_operand.vmem [shape: f32[1,128], index: 13, kind: input, shape index: {}]   ;;  %s4394_s14 = inlined_call_operand.vmem [shape: f32[128,128], index: 14, kind: input, shape index: {}]   ;;  %s4395_s15 = inlined_call_operand.vmem [shape: f32[1,128], index: 15, kind: input, shape index: {}]   ;;  %s4396_s16 = inlined_call_operand.vmem [shape: f32[128,128], index: 16, kind: input, shape index: {}]   ;;  %s4397_s17 = inlined_call_operand.vmem [shape: f32[1,128], index: 17, kind: input, shape index: {}]   ;;  %s4398_s18 = inlined_call_operand.vmem [shape: f32[128,128], index: 18, kind: input, shape index: {}]   ;;  %s4399_s19 = inlined_call_operand.vmem [shape: f32[1,128], index: 19, kind: input, shape index: {}]   ;;  %s4400_s20 = inlined_call_operand.hbm [shape: f32[2,8,128], index: 20, kind: output, shape index: {}]  }
   0x1   :  { %4408 = sst [smem:[#allocation11_spill]] %s4380_s0 }
   0x2   :  { %4409 = sst [smem:[#allocation12_spill]] %s4381_s1 }
   0x3   :  { %4410 = sst [smem:[#allocation13_spill]] %s4382_s2 }
   0x4   :  { %4411 = sst [smem:[#allocation14_spill]] %s4383_s3 }
   0x5   :  { %4412 = sst [smem:[#allocation15_spill]] %s4384_s4 }
   0x6   :  { %4413 = sst [smem:[#allocation16_spill]] %s4385_s5 }
   0x7   :  { %4414 = sst [smem:[#allocation17_spill]] %s4386_s6 }
   0x8   :  { %4415 = sst [smem:[#allocation18_spill]] %s4387_s7 }
   0x9   :  { %4416 = sst [smem:[#allocation19_spill]] %s4388_s8 }
   0xa   :  { %4417 = sst [smem:[#allocation20_spill]] %s4389_s9 }
   0xb   :  { %4418 = sst [smem:[#allocation21_spill]] %s4399_s19 }
   0xc   :  { %4419 = sst [smem:[#allocation22_spill]] %s4400_s20 }
   0xd   :  { %25 = vsyncpa [#allocation5], 0 }
   0xe   :  { %27 = vsyncpa [#allocation5 + $0x1], 0  ;;  %s3601_s1 = smov 0   ;;  %s3603_s22 = smov 0  }
   0xf   :  { %s3605_s23 = smov 0   ;;  %s3607_s24 = smov 0  }
  0x10   :  { %s3609_s2 = smov 0   ;;  %s3611_s25 = smov 0  }
  0x11 LB: > { %4420 = sst [smem:[#allocation7_spill]] %s3466_s1  ;;  %s2843_s3 = sadd.s32 4294967295, %s3486_s25   ;;  %s3486_s25 = sphi %s3611_s25, %s33_s25   ;;  %s3482_s2 = sphi %s3609_s2, %s4441_s2   ;;  %s3478_s24 = sphi %s3607_s24, %s4440_s24   ;;  %s3474_s23 = sphi %s3605_s23, %s4444_s23   ;;  %s3470_s22 = sphi %s3603_s22, %s4443_s22   ;;  %s3466_s1 = sphi %s3601_s1, %s4442_s1  }
  0x12   : > { %4421 = sst [smem:[#allocation8_spill]] %s3482_s2  ;;  %s2844_s26 = sadd.s32 4294967294, %s3486_s25  }
  0x13   : > { %s45_s27 = sadd.s32 1, %s3482_s2  ;;  %s486_s28 = sadd.s32 1, %s3474_s23 }
  0x14   : > { %p47_p0 = scmp.ge.s32.totalorder %s45_s27, 2  ;;  %p496_p1 = scmp.ne.s32.totalorder %s3474_s23, %s3470_s22 }
  0x15   : > { %p497_p2 = scmp.eq.s32.totalorder %s2843_s3, 1  ;;  %p502_p3 = scmp.ne.s32.totalorder %s3470_s22, %s3466_s1 }
  0x16   : > { %s4446_s27 = smov (%p47_p0, %s45_s27), 0  ;;  %p503_p5 = scmp.eq.s32.totalorder %s2844_s26, 1 }
  0x17   : > { %4422 = sst [smem:[#allocation9_spill]] %s4446_s27  ;;  %p3641_p4 = por %p497_p2, %p496_p1 }
  0x18   : > { %s481_s29 = ssub.s32 %s3482_s2, %s4446_s27  ;;  %p2847_p6 = scmp.ge.s32.totalorder %s3486_s25, 1 }
  0x19   : > { %s4423_s4 = scalar_select %p3641_p4, 1, 0 }
  0x1a   : > { %p484_p7 = scmp.eq.s32.totalorder %s481_s29, 0  ;;  %p3648_p8 = por %p503_p5, %p502_p3 }
  0x1b   : > { %4424 = sst [smem:[#allocation10_spill]] %s4423_s4  ;;  %p592_p9 = scmp.lt.s32.totalorder %s3486_s25, 3 }
  0x1c   : > { %s3654_s0 = scalar_select %p484_p7, %s3474_s23, %s486_s28  }
  0x1d   : > { %p593_p10 = pnand %p2847_p6, %p592_p9 }
  0x1e   : > { %p656_p11 = scmp.lt.s32.totalorder (!%p593_p10), %s3478_s24, 1  ;;  %s4426_s26 = sld [smem:[#allocation12_spill]] (!%p593_p10) }
  0x1f   : > { %596 = sbr.rel (%p593_p10) target bundleno = 2601 (0xa29), region = 100  ;;  %s4427_s19 = sld [smem:[#allocation11_spill]] (!%p593_p10) }
  0x20   : > { %s4428_s6 = sld [smem:[#allocation17_spill]] (!%p593_p10)  ;;  %s3491_s2 = smov (!%p593_p10), 64  }
  0x21   : > { %s4429_s8 = sld [smem:[#allocation19_spill]] (!%p593_p10) }
  0x22   : > { %s4431_s29 = sld [smem:[#allocation14_spill]] (!%p593_p10) }
  0x23   : > { %s4432_s20 = sld [smem:[#allocation15_spill]] (!%p593_p10) }
  0x24   : > { %s657_s21 = scalar_select %p656_p11, %s3478_s24, 1  ;;  %v3488_v2 = vmov 0.0   ;;  %v667_v11 = vlaneseq  ;;  %vm3489_vm1 = vmmov 0   ;;  %vm1037_vm2 = vcmask 261120  }
  0x25   : > { %3029 = vmatprep.subr.mxu0 %v3488_v2  ;;  %3064 = vmatprep.subr.mxu1 %v3488_v2  ;;  %s4433_s7 = sld [smem:[#allocation18_spill]]  ;;  %vm1774_vm3 = vcmask 64512  }
  0x26   : > { %s2849_s3 = sshll.u32 %s657_s21, 3  ;;  %v720_v3 = vld [vmem:[%s4428_s6 + $0x78] sm:$0xff]  ;;  %v719_v5 = vld [vmem:[%s4428_s6 + $0x70] sm:$0xff]  ;;  %v718_v7 = vld [vmem:[%s4428_s6 + $0x68] sm:$0xff]  ;;  %v668_v12 = vand.u32 127, %v667_v11  ;;  %3061 = vmatprep.mubr.msk.f32.mxu0 %vm3489_vm1, %v3488_v2  ;;  %3096 = vmatprep.mubr.msk.f32.mxu1 %vm3489_vm1, %v3488_v2  ;;  %s4434_s5 = sld [smem:[#allocation16_spill]] }
  0x27   : > { %s666_s27 = scalar_lea.vmem %s4426_s26, %s2849_s3  ;;  %s3664_s4 = scalar_lea.vmem %s4427_s19, %s2849_s3  ;;  %v813_v4 = vld [vmem:[%s4429_s8 + $0x78] sm:$0xff]  ;;  %3030 = vmatpush3.msra.mxu0 %v720_v3  ;;  %v812_v6 = vld [vmem:[%s4429_s8 + $0x70] sm:$0xff]  ;;  %v811_v8 = vld [vmem:[%s4429_s8 + $0x68] sm:$0xff] }
  0x28   : > { %v676_v0 = vld [vmem:[%s666_s27] sm:$0xff]  ;;  %3065 = vmatpush3.msra.mxu1 %v813_v4  ;;  %3031 = vmatprep.subr.mxu0 %v3488_v2  ;;  %vm669_vm0 = vcmp.lt.s32.totalorder %v668_v12, 32  ;;  %v716_v24 = vld [vmem:[%s4428_s6 + $0x58] sm:$0xff]  ;;  %v715_v26 = vld [vmem:[%s4428_s6 + $0x50] sm:$0xff]  ;;  %s4430_s27 = sld [smem:[#allocation13_spill]]  ;;  %s3490_s19 = smov 96  }
  0x29   : > { %677 = vadd.xlane.f32.xlu0 %v676_v0  ;;  %v1192_v1 = vld [vmem:[%s3664_s4] sm:$0xff]  ;;  %3066 = vmatprep.subr.mxu1 %v3488_v2  ;;  %v3703_v15 = vsel %vm669_vm0, 1.0, %v3488_v2  ;;  %v809_v25 = vld [vmem:[%s4429_s8 + $0x58] sm:$0xff]  ;;  %v808_v27 = vld [vmem:[%s4429_s8 + $0x50] sm:$0xff]  ;;  %s4435_s9 = sld [smem:[#allocation20_spill]]  ;;  %s3495_s21 = smov [#allocation4]  }
  0x2a   : > { %3032 = vmatpush3.msra.mxu0 %v719_v5  ;;  %3067 = vmatpush3.msra.mxu1 %v812_v6  ;;  %v717_v9 = vld [vmem:[%s4428_s6 + $0x60] sm:$0xff]  ;;  %v714_v28 = vld [vmem:[%s4428_s6 + $0x48] sm:$0xff]  ;;  %v712_v32 = vld [vmem:[%s4428_s6 + $0x38] sm:$0xff] }
  0x2b   : > { %3033 = vmatprep.subr.mxu0 %v3488_v2  ;;  %3068 = vmatprep.subr.mxu1 %v3488_v2  ;;  %v810_v10 = vld [vmem:[%s4429_s8 + $0x60] sm:$0xff]  ;;  %v807_v29 = vld [vmem:[%s4429_s8 + $0x48] sm:$0xff]  ;;  %v805_v33 = vld [vmem:[%s4429_s8 + $0x38] sm:$0xff] }
  0x2c   : > { %3034 = vmatpush3.msra.mxu0 %v718_v7  ;;  %3069 = vmatpush3.msra.mxu1 %v811_v8  ;;  %v713_v30 = vld [vmem:[%s4428_s6 + $0x40] sm:$0xff]  ;;  %v711_v34 = vld [vmem:[%s4428_s6 + $0x30] sm:$0xff]  ;;  %v710_v36 = vld [vmem:[%s4428_s6 + $0x28] sm:$0xff] }
  0x2d   : > { %1193 = vadd.xlane.f32.xlu0 %v1192_v1  ;;  %3035 = vmatprep.subr.mxu0 %v3488_v2  ;;  %v806_v31 = vld [vmem:[%s4429_s8 + $0x40] sm:$0xff]  ;;  %v804_v35 = vld [vmem:[%s4429_s8 + $0x30] sm:$0xff]  ;;  %v803_v37 = vld [vmem:[%s4429_s8 + $0x28] sm:$0xff] }
  0x2e   : > { %3070 = vmatprep.subr.mxu1 %v3488_v2  ;;  %3036 = vmatpush3.msra.mxu0 %v717_v9  ;;  %v709_v38 = vld [vmem:[%s4428_s6 + $0x20] sm:$0xff]  ;;  %v708_v40 = vld [vmem:[%s4428_s6 + $0x18] sm:$0xff]  ;;  %v707_v42 = vld [vmem:[%s4428_s6 + $0x10] sm:$0xff] }
  0x2f   : > { %3071 = vmatpush3.msra.mxu1 %v810_v10  ;;  %3037 = vmatprep.subr.mxu0 %v3488_v2  ;;  %v802_v39 = vld [vmem:[%s4429_s8 + $0x20] sm:$0xff]  ;;  %v801_v41 = vld [vmem:[%s4429_s8 + $0x18] sm:$0xff]  ;;  %v800_v43 = vld [vmem:[%s4429_s8 + $0x10] sm:$0xff] }
  0x30   : > { %3072 = vmatprep.subr.mxu1 %v3488_v2  ;;  %3038 = vmatpush3.msra.mxu0 %v716_v24  ;;  %v706_v44 = vld [vmem:[%s4428_s6 + $0x8] sm:$0xff]  ;;  %v705_v46 = vld [vmem:[%s4428_s6] sm:$0xff]  ;;  %v1236_v59 = vld [vmem:[%s4432_s20 + $0x78] sm:$0xff] }
  0x31   : > { %3039 = vmatprep.subr.mxu0 %v3488_v2  ;;  %3073 = vmatpush3.msra.mxu1 %v809_v25  ;;  %v799_v45 = vld [vmem:[%s4429_s8 + $0x8] sm:$0xff]  ;;  %v798_v47 = vld [vmem:[%s4429_s8] sm:$0xff]  ;;  %v1235_v60 = vld [vmem:[%s4432_s20 + $0x70] sm:$0xff] }
  0x32   : > { %3040 = vmatpush3.msra.mxu0 %v715_v26  ;;  %3074 = vmatprep.subr.mxu1 %v3488_v2  ;;  %v2852_v52 = vld [vmem:[%s4430_s27] ss:$0 sm:$0xff]  ;;  %v1234_v62 = vld [vmem:[%s4432_s20 + $0x68] sm:$0xff]  ;;  %v1228_v5 = vld [vmem:[%s4432_s20 + $0x38] sm:$0xff]  ;;  %s3492_s27 = smov 32  }
  0x33   : > { %3041 = vmatprep.subr.mxu0 %v3488_v2  ;;  %3075 = vmatpush3.msra.mxu1 %v808_v27  ;;  %v2853_v55 = vld [vmem:[%s4431_s29] ss:$0 sm:$0xff]  ;;  %v1230_v3 = vld [vmem:[%s4432_s20 + $0x48] sm:$0xff]  ;;  %v1227_v6 = vld [vmem:[%s4432_s20 + $0x30] sm:$0xff] }
  0x34   : > { %3042 = vmatpush3.msra.mxu0 %v714_v28  ;;  %3076 = vmatprep.subr.mxu1 %v3488_v2  ;;  %v1233_v63 = vld [vmem:[%s4432_s20 + $0x60] sm:$0xff]  ;;  %v1226_v7 = vld [vmem:[%s4432_s20 + $0x28] sm:$0xff]  ;;  %v1224_v10 = vld [vmem:[%s4432_s20 + $0x18] sm:$0xff] }
  0x35   : > { %3043 = vmatprep.subr.mxu0 %v3488_v2  ;;  %3077 = vmatpush3.msra.mxu1 %v807_v29  ;;  %v1229_v4 = vld [vmem:[%s4432_s20 + $0x40] sm:$0xff] }
  0x36   : > { %3044 = vmatpush3.msra.mxu0 %v713_v30  ;;  %3078 = vmatprep.subr.mxu1 %v3488_v2  ;;  %v1225_v9 = vld [vmem:[%s4432_s20 + $0x20] sm:$0xff]  ;;  %v3493_v30 = vmov 1983009808  }
  0x37   : > { %3045 = vmatprep.subr.mxu0 %v3488_v2  ;;  %3079 = vmatpush3.msra.mxu1 %v806_v31  ;;  %v2862_v25 = vld [vmem:[%s4434_s5] ss:$0 sm:$0xff]  ;;  %v904_v31 = vunpack.c.l.s4 %v3493_v30  ;;  %s4438_s5 = sld [smem:[#allocation22_spill]] }
  0x38   : > { %3046 = vmatpush3.msra.mxu0 %v712_v32  ;;  %3080 = vmatprep.subr.mxu1 %v3488_v2  ;;  %v3494_v32 = vmov 1934713408  }
  0x39   : > { %3047 = vmatprep.subr.mxu0 %v3488_v2  ;;  %3081 = vmatpush3.msra.mxu1 %v805_v33  ;;  %v936_v33 = vunpack.c.l.s4 %v3494_v32 }
  0x3a   : > { %3048 = vmatpush3.msra.mxu0 %v711_v34  ;;  %3082 = vmatprep.subr.mxu1 %v3488_v2  ;;  %v905_v34 = vunpack.c.0.s8 %v904_v31 }
  0x3b   : > { %3049 = vmatprep.subr.mxu0 %v3488_v2  ;;  %3083 = vmatpush3.msra.mxu1 %v804_v35  ;;  %v907_v35 = vshrl.u32 %v667_v11, 7 }
  0x3c   : > { %3050 = vmatpush3.msra.mxu0 %v710_v36  ;;  %3084 = vmatprep.subr.mxu1 %v3488_v2 }
  0x3d   : > { %3051 = vmatprep.subr.mxu0 %v3488_v2  ;;  %3085 = vmatpush3.msra.mxu1 %v803_v37  ;;  %v937_v37 = vunpack.c.0.s8 %v936_v33 }
  0x3e   : > { %3052 = vmatpush3.msra.mxu0 %v709_v38  ;;  %3086 = vmatprep.subr.mxu1 %v3488_v2  ;;  %v3913_v38 = vsub.s32 %v905_v34, %v907_v35 }
  0x3f   : > { %3053 = vmatprep.subr.mxu0 %v3488_v2  ;;  %3087 = vmatpush3.msra.mxu1 %v802_v39 }
  0x40   : > { %3054 = vmatpush3.msra.mxu0 %v708_v40  ;;  %3088 = vmatprep.subr.mxu1 %v3488_v2 }
  0x41   : > { %3055 = vmatprep.subr.mxu0 %v3488_v2  ;;  %3089 = vmatpush3.msra.mxu1 %v801_v41 }
  0x42   : > { %3056 = vmatpush3.msra.mxu0 %v707_v42  ;;  %3090 = vmatprep.subr.mxu1 %v3488_v2 }
  0x43   : > { %3057 = vmatprep.subr.mxu0 %v3488_v2  ;;  %3091 = vmatpush3.msra.mxu1 %v800_v43 }
  0x44   : > { %3058 = vmatpush3.msra.mxu0 %v706_v44  ;;  %3092 = vmatprep.subr.mxu1 %v3488_v2 }
  0x45   : > { %3059 = vmatprep.subr.mxu0 %v3488_v2  ;;  %3093 = vmatpush3.msra.mxu1 %v799_v45  ;;  %v3915_v45 = vsub.s32 %v937_v37, %v907_v35 }
  0x46   : > { %3060 = vmatpush3.msra.mxu0 %v705_v46  ;;  %3094 = vmatprep.subr.mxu1 %v3488_v2 }
  0x47   : > { %3095 = vmatpush3.msra.mxu1 %v798_v47  ;;  %3099 = vmatprep.subr.mxu0 %v3488_v2 }
  0x48   : > { %3134 = vmatprep.subr.mxu1 %v3488_v2 }
  0xb2   : > { %v678_v13 = vpop.xlane.xlu0 %677 }
  0xb3   : > { %v679_v14 = vmul.f32 0.03125, %v678_v13  ;;  %v1223_v13 = vld [vmem:[%s4432_s20 + $0x10] sm:$0xff] }
  0xb5   : > { %v680_v16 = vsub.f32 %v676_v0, %v679_v14  ;;  %v1232_v0 = vld [vmem:[%s4432_s20 + $0x58] sm:$0xff]  ;;  %v1222_v14 = vld [vmem:[%s4432_s20 + $0x8] sm:$0xff] }
  0xb6   : > { %v1194_v17 = vpop.xlane.xlu0 %1193 }
  0xb7   : > { %v1195_v18 = vmul.f32 0.03125, %v1194_v17  ;;  %v3706_v19 = vmul.f32 %v3703_v15, %v680_v16  ;;  %v1221_v17 = vld [vmem:[%s4432_s20] sm:$0xff] }
  0xb9   : > { %v1196_v20 = vsub.f32 %v1192_v1, %v1195_v18  ;;  %v682_v21 = vmul.f32 %v3706_v19, %v3706_v19  ;;  %v1231_v1 = vld [vmem:[%s4432_s20 + $0x50] sm:$0xff] }
  0xbb   : > { %683 = vadd.xlane.f32.xlu1 %v682_v21  ;;  %v3711_v22 = vmul.f32 %v3703_v15, %v1196_v20 }
  0xbd   : > { %v1198_v23 = vmul.f32 %v3711_v22, %v3711_v22 }
  0xbf   : > { %1199 = vadd.xlane.f32.xlu1 %v1198_v23 }
 0x144   : > { %v684_v48 = vpop.xlane.xlu1 %683 }
 0x145   : > { %v685_v49 = vmul.f32 0.03125, %v684_v48 }
 0x147   : > { %v686_v50 = vadd.f32 1e-05, %v685_v49 }
 0x148   : > { %v1200_v54 = vpop.xlane.xlu1 %1199 }
 0x149   : > { %3385 = vrsqrt.f32 %v686_v50  ;;  %v1201_v57 = vmul.f32 0.03125, %v1200_v54 }
 0x14b   : > { %v1202_v61 = vadd.f32 1e-05, %v1201_v57 }
 0x14d   : > { %3387 = vrsqrt.f32 %v1202_v61 }
 0x156   : > { %v3386_v51 = vpop.eup %3385 }
 0x157   : > { %v688_v53 = vmul.f32 %v3386_v51, %v3706_v19  ;;  %v2854_v19 = vld [vmem:[%s4433_s7] ss:$0 sm:$0xff] }
 0x159   : > { %v696_v56 = vmul.f32 %v2852_v52, %v688_v53 }
 0x15a   : > { %v3388_v8 = vpop.eup %3387 }
 0x15b   : > { %v704_v58 = vadd.f32 %v2853_v55, %v696_v56  ;;  %v1204_v12 = vmul.f32 %v3388_v8, %v3711_v22 }
 0x15d   : > { %3062 = vmatmul.mubr.f32.vlgmr.msra.gmra.mxu0 %v704_v58  ;;  %3097 = vmatmul.mubr.f32.vlgmr.msra.gmra.mxu1 %v704_v58  ;;  %v1212_v16 = vmul.f32 %v2852_v52, %v1204_v12 }
 0x15e   : > { %3100 = vmatpush3.msra.mxu0 %v1236_v59  ;;  %3131 = vmatprep.mubr.msk.f32.mxu0 %vm3489_vm1, %v3488_v2 }
 0x15f   : > { %3101 = vmatprep.subr.mxu0 %v3488_v2  ;;  %3136 = vmatprep.mubr.msk.f32.mxu1 %vm3489_vm1, %v3488_v2  ;;  %v1220_v18 = vadd.f32 %v2853_v55, %v1212_v16 }
 0x160   : > { %3102 = vmatpush3.msra.mxu0 %v1235_v60 }
 0x161   : > { %3103 = vmatprep.subr.mxu0 %v3488_v2 }
 0x162   : > { %3104 = vmatpush3.msra.mxu0 %v1234_v62 }
 0x163   : > { %3105 = vmatprep.subr.mxu0 %v3488_v2 }
 0x164   : > { %3106 = vmatpush3.msra.mxu0 %v1233_v63 }
 0x165   : > { %3107 = vmatprep.subr.mxu0 %v3488_v2 }
 0x166   : > { %3108 = vmatpush3.msra.mxu0 %v1232_v0 }
 0x167   : > { %3109 = vmatprep.subr.mxu0 %v3488_v2 }
 0x168   : > { %3110 = vmatpush3.msra.mxu0 %v1231_v1 }
 0x169   : > { %3111 = vmatprep.subr.mxu0 %v3488_v2 }
 0x16a   : > { %3112 = vmatpush3.msra.mxu0 %v1230_v3 }
 0x16b   : > { %3113 = vmatprep.subr.mxu0 %v3488_v2 }
 0x16c   : > { %3114 = vmatpush3.msra.mxu0 %v1229_v4 }
 0x16d   : > { %3115 = vmatprep.subr.mxu0 %v3488_v2 }
 0x16e   : > { %3116 = vmatpush3.msra.mxu0 %v1228_v5 }
 0x16f   : > { %3117 = vmatprep.subr.mxu0 %v3488_v2 }
 0x170   : > { %3118 = vmatpush3.msra.mxu0 %v1227_v6 }
 0x171   : > { %3119 = vmatprep.subr.mxu0 %v3488_v2 }
 0x172   : > { %3120 = vmatpush3.msra.mxu0 %v1226_v7 }
 0x173   : > { %3121 = vmatprep.subr.mxu0 %v3488_v2 }
 0x174   : > { %3122 = vmatpush3.msra.mxu0 %v1225_v9 }
 0x175   : > { %3123 = vmatprep.subr.mxu0 %v3488_v2 }
 0x176   : > { %3124 = vmatpush3.msra.mxu0 %v1224_v10 }
 0x177   : > { %3125 = vmatprep.subr.mxu0 %v3488_v2 }
 0x178   : > { %3126 = vmatpush3.msra.mxu0 %v1223_v13 }
 0x179   : > { %3127 = vmatprep.subr.mxu0 %v3488_v2 }
 0x17a   : > { %3128 = vmatpush3.msra.mxu0 %v1222_v14 }
 0x17b   : > { %3129 = vmatprep.subr.mxu0 %v3488_v2 }
 0x17c   : > { %3130 = vmatpush3.msra.mxu0 %v1221_v17 }
 0x17d   : > { %3132 = vmatmul.mubr.f32.vlgmr.msra.gmra.mxu0 %v1220_v18  ;;  %3218 = vmatprep.subr.mxu0 %v3488_v2 }
 0x17e   : > { %3250 = vmatprep.mubr.msk.f32.mxu0 %vm3489_vm1, %v3488_v2 }
 0x21d   : > { %v794_v20 = vpop.f32.mrf.mxu0  ;;  %v3896_v21 = vpop.f32.mrf.mxu1 }
 0x21e   : > { %v795_v22 = vadd.f32 %v2854_v19, %v794_v20 }
 0x21f   : > { %v3063_v23 = vpop.f32.mrf.mxu0  ;;  %v3098_v24 = vpop.f32.mrf.mxu1 }
 0x220   : > { %892 = vrot.lane.b32.xlu0 %v795_v22, %s3490_s19  ;;  %895 = vrot.lane.b32.xlu1 %v795_v22, %s3491_s2 }
 0x224   : > { %898 = vrot.lane.b32.xlu1 %v795_v22, %s3492_s27 }
 0x23d   : > { %v1310_v26 = vpop.f32.mrf.mxu0 }
 0x23e   : > { %v1311_v27 = vadd.f32 %v2862_v25, %v1310_v26 }
 0x23f   : > { %v3133_v28 = vpop.f32.mrf.mxu0 }
 0x240   : > { %v3904_v29 = vmul.f32 0.35355338, %v1311_v27 }
 0x242   : > { %1319 = vrot.lane.b32.xlu0 %v3904_v29, %s3491_s2  ;;  %1316 = vrot.lane.b32.xlu1 %v3904_v29, %s3490_s19 }
 0x246   : > { %1322 = vrot.lane.b32.xlu1 %v3904_v29, %s3492_s27 }
 0x292   : > { %v896_v36 = vpop.permute.xlu1 %895  ;;  %v893_v41 = vpop.permute.xlu0 %892 }
 0x293   : > { %v901_v39 = vcombine.low %v795_v22, %v896_v36  ;;  %v902_v40 = vcombine.high %v795_v22, %v896_v36 }
 0x295   : > { %v909_v46 = vrot.slane %v901_v39, %v3913_v38  ;;  %v916_v47 = vrot.slane %v902_v40, %v3913_v38 }
 0x296   : > { %v899_v42 = vpop.permute.xlu1 %898 }
 0x297   : > { %v917_v43 = vcombine.low %v893_v41, %v899_v42  ;;  %v918_v44 = vcombine.high %v893_v41, %v899_v42 }
 0x299   : > { %v925_v48 = vrot.slane %v917_v43, %v3913_v38  ;;  %v932_v11 = vrot.slane %v918_v44, %v3913_v38 }
 0x29b   : > { %v933_v49 = vcombine.low %v909_v46, %v925_v48  ;;  %v934_v50 = vcombine.high %v909_v46, %v925_v48  ;;  %v949_v51 = vcombine.low %v916_v47, %v932_v11  ;;  %v950_v52 = vcombine.high %v916_v47, %v932_v11 }
 0x29d   : > { %v941_v53 = vrot.slane %v933_v49, %v3915_v45  ;;  %v948_v54 = vrot.slane %v934_v50, %v3915_v45  ;;  %v957_v55 = vrot.slane %v949_v51, %v3915_v45  ;;  %v964_v56 = vrot.slane %v950_v52, %v3915_v45 }
 0x29f   : > { %v969_v57 = vcombine.low %v941_v53, %v948_v54  ;;  %v2856_v58 = vcombine.high %v941_v53, %v948_v54  ;;  %v985_v59 = vcombine.low %v957_v55, %v964_v56  ;;  %v2857_v60 = vcombine.high %v957_v55, %v964_v56 }
 0x2a1   : > { %v976_v61 = vrot.slane %v969_v57, %v3913_v38  ;;  %v984_v62 = vrot.slane %v2856_v58, %v3913_v38  ;;  %v992_v63 = vrot.slane %v985_v59, %v3913_v38  ;;  %v1000_v0 = vrot.slane %v2857_v60, %v3913_v38 }
 0x2a3   : > { %v1001_v1 = vcombine.low %v976_v61, %v984_v62  ;;  %v1002_v3 = vcombine.high %v976_v61, %v984_v62  ;;  %v1017_v4 = vcombine.low %v992_v63, %v1000_v0  ;;  %v1018_v5 = vcombine.high %v992_v63, %v1000_v0 }
 0x2a5   : > { %v1009_v6 = vrot.slane %v1001_v1, %v3915_v45  ;;  %v1016_v7 = vrot.slane %v1002_v3, %v3915_v45  ;;  %v1025_v8 = vrot.slane %v1017_v4, %v3915_v45  ;;  %v1032_v9 = vrot.slane %v1018_v5, %v3915_v45 }
 0x2a7   : > { %v1033_v10 = vcombine.low %v1009_v6, %v1025_v8  ;;  %v1034_v12 = vcombine.high %v1009_v6, %v1025_v8  ;;  %v1035_v13 = vcombine.low %v1016_v7, %v1032_v9  ;;  %v1036_v14 = vcombine.high %v1016_v7, %v1032_v9 }
 0x2a9   : > { %1038 = vst.msk [vmem:[#allocation2] sm:$0xff] %vm1037_vm2, %v1033_v10  ;;  %1039 = vst.msk [vmem:[#allocation2 + $0x8] sm:$0xff] %vm1037_vm2, %v1034_v12  ;;  %v2855_v10 = vld [vmem:[%s4435_s9] ss:$0 sm:$0xff] }
 0x2aa   : > { %1040 = vst.msk [vmem:[#allocation2 + $0x10] sm:$0xff] %vm1037_vm2, %v1035_v13  ;;  %1041 = vst.msk [vmem:[#allocation2 + $0x18] sm:$0xff] %vm1037_vm2, %v1036_v14  ;;  %v888_v12 = vadd.f32 %v2855_v10, %v3896_v21 }
 0x2b0   : > { %v1461_v16 = vld [vmem:[#allocation2] sm:$0xff]  ;;  %v1462_v53 = vld [vmem:[#allocation2 + $0x8] sm:$0xff] }
 0x2b1   : > { %3135 = vmatpush3.xpose.msk.msra.mxu1 %vm1037_vm2, %v1461_v16  ;;  %v1463_v57 = vld [vmem:[#allocation2 + $0x10] sm:$0xff]  ;;  %v1464_v59 = vld [vmem:[#allocation2 + $0x18] sm:$0xff] }
 0x2b2   : > { %3139 = vmatprep.subr.mxu1 %v3488_v2 }
 0x2b4   : > { %v1317_v17 = vpop.permute.xlu1 %1316  ;;  %v1320_v18 = vpop.permute.xlu0 %1319 }
 0x2b5   : > { %v1325_v19 = vcombine.low %v3904_v29, %v1320_v18  ;;  %v1326_v20 = vcombine.high %v3904_v29, %v1320_v18 }
 0x2b7   : > { %v1333_v25 = vrot.slane %v1325_v19, %v3913_v38  ;;  %v1340_v26 = vrot.slane %v1326_v20, %v3913_v38 }
 0x2b8   : > { %v1323_v22 = vpop.permute.xlu1 %1322 }
 0x2b9   : > { %v1341_v23 = vcombine.low %v1317_v17, %v1323_v22  ;;  %v1342_v24 = vcombine.high %v1317_v17, %v1323_v22 }
 0x2bb   : > { %v1349_v27 = vrot.slane %v1341_v23, %v3913_v38  ;;  %v1356_v28 = vrot.slane %v1342_v24, %v3913_v38 }
 0x2bd   : > { %v1357_v30 = vcombine.low %v1333_v25, %v1349_v27  ;;  %v1358_v31 = vcombine.high %v1333_v25, %v1349_v27  ;;  %v1373_v32 = vcombine.low %v1340_v26, %v1356_v28  ;;  %v1374_v33 = vcombine.high %v1340_v26, %v1356_v28 }
 0x2bf   : > { %v1365_v34 = vrot.slane %v1357_v30, %v3915_v45  ;;  %v1372_v35 = vrot.slane %v1358_v31, %v3915_v45  ;;  %v1381_v29 = vrot.slane %v1373_v32, %v3915_v45  ;;  %v1388_v36 = vrot.slane %v1374_v33, %v3915_v45 }
 0x2c1   : > { %v1393_v37 = vcombine.low %v1365_v34, %v1372_v35  ;;  %v2863_v39 = vcombine.high %v1365_v34, %v1372_v35  ;;  %v1409_v40 = vcombine.low %v1381_v29, %v1388_v36  ;;  %v2864_v41 = vcombine.high %v1381_v29, %v1388_v36 }
 0x2c3   : > { %v1400_v42 = vrot.slane %v1393_v37, %v3913_v38  ;;  %v1408_v43 = vrot.slane %v2863_v39, %v3913_v38  ;;  %v1416_v44 = vrot.slane %v1409_v40, %v3913_v38  ;;  %v1424_v46 = vrot.slane %v2864_v41, %v3913_v38 }
 0x2c5   : > { %v1425_v47 = vcombine.low %v1400_v42, %v1408_v43  ;;  %v1441_v48 = vcombine.low %v1416_v44, %v1424_v46  ;;  %v1426_v50 = vcombine.high %v1400_v42, %v1408_v43  ;;  %v1442_v51 = vcombine.high %v1416_v44, %v1424_v46 }
 0x2c7   : > { %v1433_v11 = vrot.slane %v1425_v47, %v3915_v45  ;;  %v1449_v49 = vrot.slane %v1441_v48, %v3915_v45  ;;  %v1440_v55 = vrot.slane %v1426_v50, %v3915_v45  ;;  %v1456_v56 = vrot.slane %v1442_v51, %v3915_v45 }
 0x2c9   : > { %v1457_v52 = vcombine.low %v1433_v11, %v1449_v49  ;;  %v1458_v54 = vcombine.high %v1433_v11, %v1449_v49  ;;  %v1459_v58 = vcombine.low %v1440_v55, %v1456_v56  ;;  %v1460_v60 = vcombine.high %v1440_v55, %v1456_v56 }
 0x2cb   : > { %3137 = vmatmul.mubr.msk.f32.vlgmr.msra.gmra.mxu1 %vm1037_vm2, %v1457_v52 }
 0x2cc   : > { %3140 = vmatpush3.xpose.msk.msra.mxu1 %vm1037_vm2, %v1462_v53  ;;  %3141 = vmatprep.mubr.msk.f32.mxu1 %vm3489_vm1, %v3488_v2 }
 0x2cd   : > { %3144 = vmatprep.subr.mxu1 %v3488_v2 }
 0x2cf   : > { %3142 = vmatmul.mubr.msk.f32.vlgmr.msra.gmra.mxu1 %vm1037_vm2, %v1458_v54 }
 0x2d0   : > { %3145 = vmatpush3.xpose.msk.msra.mxu1 %vm1037_vm2, %v1463_v57  ;;  %3146 = vmatprep.mubr.msk.f32.mxu1 %vm3489_vm1, %v3488_v2 }
 0x2d1   : > { %3149 = vmatprep.subr.mxu1 %v3488_v2 }
 0x2d3   : > { %3147 = vmatmul.mubr.msk.f32.vlgmr.msra.gmra.mxu1 %vm1037_vm2, %v1459_v58 }
 0x2d4   : > { %3150 = vmatpush3.xpose.msk.msra.mxu1 %vm1037_vm2, %v1464_v59  ;;  %3151 = vmatprep.mubr.msk.f32.mxu1 %vm3489_vm1, %v3488_v2 }
 0x2d5   : > { %3154 = vmatprep.subr.mxu1 %v3488_v2 }
 0x2d7   : > { %3152 = vmatmul.mubr.msk.f32.vlgmr.msra.gmra.mxu1 %vm1037_vm2, %v1460_v60 }
 0x2d8   : > { %3156 = vmatprep.mubr.msk.f32.mxu1 %vm3489_vm1, %v3488_v2 }
 0x38b   : > { %v1542_v61 = vpop.f32.mrf.mxu1 }
 0x38c   : > { %v1775_v62 = vsel %vm1774_vm3, %v1542_v61, -inf }
 0x38d   : > { %1776 = vmax.xlane.f32.xlu0 %v1775_v62  ;;  %v3138_v63 = vpop.f32.mrf.mxu1 }
 0x38f   : > { %v1618_v0 = vpop.f32.mrf.mxu1 }
 0x390   : > { %v1778_v1 = vsel %vm1774_vm3, %v1618_v0, -inf }
 0x391   : > { %1779 = vmax.xlane.f32.xlu1 %v1778_v1  ;;  %v3143_v3 = vpop.f32.mrf.mxu1 }
 0x393   : > { %v1694_v4 = vpop.f32.mrf.mxu1 }
 0x394   : > { %v1781_v5 = vsel %vm1774_vm3, %v1694_v4, -inf }
 0x395   : > { %1782 = vmax.xlane.f32.xlu0 %v1781_v5  ;;  %v3148_v6 = vpop.f32.mrf.mxu1 }
 0x397   : > { %v1770_v7 = vpop.f32.mrf.mxu1 }
 0x398   : > { %v1784_v8 = vsel %vm1774_vm3, %v1770_v7, -inf }
 0x399   : > { %1785 = vmax.xlane.f32.xlu0 %v1784_v8  ;;  %v3153_v9 = vpop.f32.mrf.mxu1 }
 0x3a2   : > { %1043 = vrot.lane.b32.xlu1 %v888_v12, %s3490_s19  ;;  %s4437_s19 = sld [smem:[#allocation21_spill]] }
 0x3a6   : > { %1049 = vrot.lane.b32.xlu1 %v888_v12, %s3492_s27 }
 0x416   : > { %v1777_v13 = vpop.xlane.xlu0 %1776 }
 0x417   : > { %v1787_v14 = vsub.f32 %v1542_v61, %v1777_v13 }
 0x419   : > { %v1791_v16 = vmul.f32 1.442695, %v1787_v14 }
 0x41a   : > { %v1780_v17 = vpop.xlane.xlu1 %1779 }
 0x41b   : > { %3389 = vpow2.f32 %v1791_v16  ;;  %v1788_v18 = vsub.f32 %v1618_v0, %v1780_v17 }
 0x41d   : > { %v1793_v19 = vmul.f32 1.442695, %v1788_v18 }
 0x41e   : > { %v1783_v24 = vpop.xlane.xlu0 %1782  ;;  %v1044_v35 = vpop.permute.xlu1 %1043 }
 0x41f   : > { %3391 = vpow2.f32 %v1793_v19  ;;  %v1789_v25 = vsub.f32 %v1694_v4, %v1783_v24 }
 0x421   : > { %v1795_v27 = vmul.f32 1.442695, %v1789_v25 }
 0x422   : > { %v1786_v26 = vpop.xlane.xlu0 %1785  ;;  %v1050_v29 = vpop.permute.xlu1 %1049 }
 0x423   : > { %v1790_v28 = vsub.f32 %v1770_v7, %v1786_v26  ;;  %3393 = vpow2.f32 %v1795_v27  ;;  %v1068_v37 = vcombine.low %v1044_v35, %v1050_v29  ;;  %v1069_v39 = vcombine.high %v1044_v35, %v1050_v29  ;;  %v2114_v27 = vld [vmem:[%s4390_s10 + $0x18] sm:$0xff]  ;;  %v2116_v29 = vld [vmem:[%s4390_s10 + $0x28] sm:$0xff] }
 0x425   : > { %v1797_v30 = vmul.f32 1.442695, %v1790_v28  ;;  %v1076_v43 = vrot.slane %v1068_v37, %v3913_v38  ;;  %v1083_v44 = vrot.slane %v1069_v39, %v3913_v38  ;;  %v2113_v28 = vld [vmem:[%s4390_s10 + $0x10] sm:$0xff]  ;;  %v2115_v37 = vld [vmem:[%s4390_s10 + $0x20] sm:$0xff] }
 0x427   : > { %3395 = vpow2.f32 %v1797_v30  ;;  %v2112_v30 = vld [vmem:[%s4390_s10 + $0x8] sm:$0xff] }
 0x428   : > { %v3985_v20 = vpop.eup %3389 }
 0x429   : > { %v1799_v22 = vsel %vm1774_vm3, %v3985_v20, 0.0 }
 0x42a   : > { %1800 = vadd.xlane.f32.xlu0 %v1799_v22 }
 0x42c   : > { %v3989_v23 = vpop.eup %3391 }
 0x42d   : > { %v1802_v21 = vsel %vm1774_vm3, %v3989_v23, 0.0 }
 0x42e   : > { %1803 = vadd.xlane.f32.xlu1 %v1802_v21 }
 0x430   : > { %v3994_v31 = vpop.eup %3393 }
 0x431   : > { %v1805_v32 = vsel %vm1774_vm3, %v3994_v31, 0.0 }
 0x434   : > { %v3998_v33 = vpop.eup %3395 }
 0x435   : > { %v1808_v34 = vsel %vm1774_vm3, %v3998_v33, 0.0 }
 0x440   : > { %1046 = vrot.lane.b32.xlu0 %v888_v12, %s3491_s2  ;;  %s2888_s2 = sshll.u32 %s3478_s24, 7  ;;  %s3414_s24 = sshll.u32 %s3495_s21, 4  ;;  %s3415_s24 = int_to_ptr.vmem [resolvable:$false] %s3414_s24 }
 0x441   : > { %s4340_s7 = scalar_lea.hbm %s4438_s5, %s2888_s2 }
 0x45f   : > { %1806 = vadd.xlane.f32.xlu0 %v1805_v32  ;;  %v2118_v32 = vld [vmem:[%s4390_s10 + $0x38] sm:$0xff] }
 0x463   : > { %1809 = vadd.xlane.f32.xlu0 %v1808_v34  ;;  %v2117_v34 = vld [vmem:[%s4390_s10 + $0x30] sm:$0xff] }
 0x4b3   : > { %v1801_v36 = vpop.xlane.xlu0 %1800 }
 0x4b4   : > { %3397 = vrcp.f32 %v1801_v36 }
 0x4b7   : > { %v1047_v40 = vpop.permute.xlu0 %1046  ;;  %v1804_v59 = vpop.xlane.xlu1 %1803 }
 0x4b8   : > { %v1052_v41 = vcombine.low %v888_v12, %v1047_v40  ;;  %v1053_v42 = vcombine.high %v888_v12, %v1047_v40  ;;  %3399 = vrcp.f32 %v1804_v59  ;;  %v2122_v40 = vld [vmem:[%s4390_s10 + $0x58] sm:$0xff] }
 0x4ba   : > { %v1060_v46 = vrot.slane %v1052_v41, %v3913_v38  ;;  %v1067_v47 = vrot.slane %v1053_v42, %v3913_v38  ;;  %v2121_v41 = vld [vmem:[%s4390_s10 + $0x50] sm:$0xff]  ;;  %v2120_v42 = vld [vmem:[%s4390_s10 + $0x48] sm:$0xff] }
 0x4bc   : > { %v1084_v48 = vcombine.low %v1060_v46, %v1076_v43  ;;  %v1085_v11 = vcombine.high %v1060_v46, %v1076_v43  ;;  %v1100_v49 = vcombine.low %v1067_v47, %v1083_v44  ;;  %v1101_v50 = vcombine.high %v1067_v47, %v1083_v44  ;;  %v2119_v43 = vld [vmem:[%s4390_s10 + $0x40] sm:$0xff]  ;;  %v2126_v44 = vld [vmem:[%s4390_s10 + $0x78] sm:$0xff]  ;;  %v2125_v47 = vld [vmem:[%s4390_s10 + $0x70] sm:$0xff] }
 0x4be   : > { %v1092_v51 = vrot.slane %v1084_v48, %v3915_v45  ;;  %v1099_v52 = vrot.slane %v1085_v11, %v3915_v45  ;;  %v1108_v53 = vrot.slane %v1100_v49, %v3915_v45  ;;  %v1115_v54 = vrot.slane %v1101_v50, %v3915_v45  ;;  %v2124_v11 = vld [vmem:[%s4390_s10 + $0x68] sm:$0xff]  ;;  %v2123_v50 = vld [vmem:[%s4390_s10 + $0x60] sm:$0xff] }
 0x4c0   : > { %v1120_v55 = vcombine.low %v1092_v51, %v1099_v52  ;;  %v2858_v56 = vcombine.high %v1092_v51, %v1099_v52  ;;  %v1136_v57 = vcombine.low %v1108_v53, %v1115_v54  ;;  %v2859_v58 = vcombine.high %v1108_v53, %v1115_v54 }
 0x4c2   : > { %v1127_v60 = vrot.slane %v1120_v55, %v3913_v38  ;;  %v1135_v61 = vrot.slane %v2858_v56, %v3913_v38  ;;  %v1143_v62 = vrot.slane %v1136_v57, %v3913_v38  ;;  %v1151_v63 = vrot.slane %v2859_v58, %v3913_v38  ;;  %v3398_v38 = vpop.eup %3397 }
 0x4c3   : > { %v1815_v16 = vmul.f32 %v3398_v38, %v3985_v20  ;;  %v2470_v38 = vld [vmem:[%s4394_s14 + $0x58] sm:$0xff] }
 0x4c4   : > { %v1152_v0 = vcombine.low %v1127_v60, %v1135_v61  ;;  %v1153_v1 = vcombine.high %v1127_v60, %v1135_v61  ;;  %v1168_v3 = vcombine.low %v1143_v62, %v1151_v63  ;;  %v1169_v4 = vcombine.high %v1143_v62, %v1151_v63  ;;  %v2881_v61 = vld [vmem:[%s4391_s11] ss:$0 sm:$0xff] }
 0x4c5   : > { %v3400_v17 = vpop.eup %3399 }
 0x4c6   : > { %v1160_v5 = vrot.slane %v1152_v0, %v3915_v45  ;;  %v1167_v6 = vrot.slane %v1153_v1, %v3915_v45  ;;  %v1176_v7 = vrot.slane %v1168_v3, %v3915_v45  ;;  %v1183_v8 = vrot.slane %v1169_v4, %v3915_v45  ;;  %v3409_v1 = vld [vmem:[%s3664_s4] sm:$0xff]  ;;  %v2474_v4 = vld [vmem:[%s4394_s14 + $0x78] sm:$0xff]  ;;  %s653_s4 = sand.u32 1, %s3470_s22  }
 0x4c7   : > { %v1816_v18 = vmul.f32 %v3400_v17, %v3989_v23  ;;  %3219 = vmatpush3.msra.mxu0 %v2474_v4  ;;  %v2466_v17 = vld [vmem:[%s4394_s14 + $0x38] sm:$0xff]  ;;  %s2848_s28 = sshll.u32 %s653_s4, 3  ;;  %s2746_s8 = scalar_lea.sflag [#allocation5], %s653_s4 }
 0x4c8   : > { %v1184_v9 = vcombine.low %v1160_v5, %v1176_v7  ;;  %v1185_v10 = vcombine.high %v1160_v5, %v1176_v7  ;;  %v1186_v12 = vcombine.low %v1167_v6, %v1183_v8  ;;  %v1187_v13 = vcombine.high %v1167_v6, %v1183_v8  ;;  %v2473_v5 = vld [vmem:[%s4394_s14 + $0x70] sm:$0xff]  ;;  %3220 = vmatprep.subr.mxu0 %v3488_v2  ;;  %v2472_v6 = vld [vmem:[%s4394_s14 + $0x68] sm:$0xff]  ;;  %v2471_v7 = vld [vmem:[%s4394_s14 + $0x60] sm:$0xff]  ;;  %s655_s27 = scalar_lea.vmem [#allocation4], %s2848_s28  ;;  %s3416_s28 = scalar_lea.vmem %s3415_s24, 256 }
 0x4c9   : > { %3221 = vmatpush3.msra.mxu0 %v2473_v5  ;;  %s2760_s6 = sshll.u32 %s655_s27, 4  ;;  %s2761_s6 = int_to_ptr.vmem [resolvable:$true] %s2760_s6 }
 0x4ca   : > { %1188 = vst.msk [vmem:[#allocation3] sm:$0xff] %vm1037_vm2, %v1184_v9  ;;  %1189 = vst.msk [vmem:[#allocation3 + $0x8] sm:$0xff] %vm1037_vm2, %v1185_v10  ;;  %3222 = vmatprep.subr.mxu0 %v3488_v2  ;;  %s3410_s9 = scalar_lea.vmem %s2761_s6, 128  ;;  %p3417_p1 = scmp.lt.s32.totalorder %s2761_s6, %s3415_s24 }
 0x4cb   : > { %1190 = vst.msk [vmem:[#allocation3 + $0x10] sm:$0xff] %vm1037_vm2, %v1186_v12  ;;  %1191 = vst.msk [vmem:[#allocation3 + $0x18] sm:$0xff] %vm1037_vm2, %v1187_v13  ;;  %3223 = vmatpush3.msra.mxu0 %v2472_v6  ;;  %p3411_p12 = scmp.ne.s32.totalorder %s2761_s6, %s3410_s9  ;;  %p3418_p2 = scmp.lt.s32.totalorder %s3416_s28, %s3410_s9 }
 0x4cc   : > { %3224 = vmatprep.subr.mxu0 %v3488_v2 }
 0x4cd   : > { %3225 = vmatpush3.msra.mxu0 %v2471_v7  ;;  %p3412_p13 = pnand %p3411_p12, %p3641_p4  ;;  %p3419_p3 = por %p3418_p2, %p3417_p1 }
 0x4ce   : > { %3226 = vmatprep.subr.mxu0 %v3488_v2 }
 0x4cf   : > { %3227 = vmatpush3.msra.mxu0 %v2470_v38  ;;  %v2885_v38 = vld [vmem:[%s4397_s17] ss:$0 sm:$0xff]  ;;  %p3413_p0 = pneg %p3412_p13 }
 0x4d0   : > { %3228 = vmatprep.subr.mxu0 %v3488_v2 }
 0x4d1   : > { %v1465_v14 = vld [vmem:[#allocation3] sm:$0xff]  ;;  %v1466_v45 = vld [vmem:[#allocation3 + $0x8] sm:$0xff]  ;;  %p3420_p5 = pnand %p3419_p3, %p3413_p0 }
 0x4d2   : > { %3155 = vmatpush3.msra.mxu1 %v1465_v14  ;;  %v1467_v19 = vld [vmem:[#allocation3 + $0x10] sm:$0xff]  ;;  %v1468_v25 = vld [vmem:[#allocation3 + $0x18] sm:$0xff] }
 0x4d3   : > { %3157 = vmatmul.mubr.msk.f32.vlgmr.msra.gmra.mxu1 %vm1774_vm3, %v1815_v16  ;;  %3159 = vmatprep.subr.mxu1 %v3488_v2  ;;  %v2469_v14 = vld [vmem:[%s4394_s14 + $0x50] sm:$0xff]  ;;  %v2467_v16 = vld [vmem:[%s4394_s14 + $0x40] sm:$0xff] }
 0x4d4   : > { %3160 = vmatpush3.msra.mxu1 %v1466_v45  ;;  %3161 = vmatprep.mubr.msk.f32.mxu1 %vm3489_vm1, %v3488_v2  ;;  %v2465_v45 = vld [vmem:[%s4394_s14 + $0x30] sm:$0xff] }
 0x4d5   : > { %3164 = vmatprep.subr.mxu1 %v3488_v2  ;;  %3229 = vmatpush3.msra.mxu0 %v2469_v14 }
 0x4d6   : > { %3230 = vmatprep.subr.mxu0 %v3488_v2 }
 0x4d7   : > { %3162 = vmatmul.mubr.msk.f32.vlgmr.msra.gmra.mxu1 %vm1774_vm3, %v1816_v18  ;;  %v2464_v18 = vld [vmem:[%s4394_s14 + $0x28] sm:$0xff] }
 0x4d8   : > { %3165 = vmatpush3.msra.mxu1 %v1467_v19  ;;  %3166 = vmatprep.mubr.msk.f32.mxu1 %vm3489_vm1, %v3488_v2  ;;  %v2463_v19 = vld [vmem:[%s4394_s14 + $0x20] sm:$0xff] }
 0x4d9   : > { %3169 = vmatprep.subr.mxu1 %v3488_v2 }
 0x4e8   : > { %v1807_v20 = vpop.xlane.xlu0 %1806 }
 0x4e9   : > { %3401 = vrcp.f32 %v1807_v20  ;;  %v2462_v20 = vld [vmem:[%s4394_s14 + $0x18] sm:$0xff] }
 0x4ec   : > { %v1810_v22 = vpop.xlane.xlu0 %1809 }
 0x4ed   : > { %3403 = vrcp.f32 %v1810_v22  ;;  %v2461_v22 = vld [vmem:[%s4394_s14 + $0x10] sm:$0xff] }
 0x4f6   : > { %v3402_v21 = vpop.eup %3401 }
 0x4f7   : > { %v1817_v24 = vmul.f32 %v3402_v21, %v3994_v31  ;;  %v2111_v31 = vld [vmem:[%s4390_s10] sm:$0xff]  ;;  %v2460_v21 = vld [vmem:[%s4394_s14 + $0x8] sm:$0xff] }
 0x4f9   : > { %3167 = vmatmul.mubr.msk.f32.vlgmr.msra.gmra.mxu1 %vm1774_vm3, %v1817_v24  ;;  %v2459_v24 = vld [vmem:[%s4394_s14] sm:$0xff] }
 0x4fa   : > { %v3404_v23 = vpop.eup %3403  ;;  %3170 = vmatpush3.msra.mxu1 %v1468_v25  ;;  %3171 = vmatprep.mubr.msk.f32.mxu1 %vm3489_vm1, %v3488_v2  ;;  %v2572_v25 = vld [vmem:[%s4396_s16 + $0x78] sm:$0xff] }
 0x4fb   : > { %v1818_v26 = vmul.f32 %v3404_v23, %v3998_v33  ;;  %3174 = vmatprep.subr.mxu1 %v3488_v2  ;;  %v2571_v23 = vld [vmem:[%s4396_s16 + $0x70] sm:$0xff] }
 0x4fd   : > { %3172 = vmatmul.mubr.msk.f32.vlgmr.msra.gmra.mxu1 %vm1774_vm3, %v1818_v26  ;;  %v2570_v26 = vld [vmem:[%s4396_s16 + $0x68] sm:$0xff] }
 0x4fe   : > { %3175 = vmatpush3.msra.mxu1 %v2114_v27  ;;  %3182 = vmatprep.mubr.msk.f32.mxu1 %vm3489_vm1, %v3488_v2  ;;  %v2569_v27 = vld [vmem:[%s4396_s16 + $0x60] sm:$0xff] }
 0x4ff   : > { %3176 = vmatprep.subr.mxu1 %v3488_v2 }
 0x500   : > { %3177 = vmatpush3.msra.mxu1 %v2113_v28 }
 0x501   : > { %3178 = vmatprep.subr.mxu1 %v3488_v2 }
 0x502   : > { %3179 = vmatpush3.msra.mxu1 %v2112_v30 }
 0x503   : > { %3180 = vmatprep.subr.mxu1 %v3488_v2 }
 0x504   : > { %3181 = vmatpush3.msra.mxu1 %v2111_v31 }
 0x505   : > { %3185 = vmatprep.subr.mxu1 %v3488_v2 }
 0x593   : > { %v1888_v33 = vpop.f32.mrf.mxu1 }
 0x594   : > { %3183 = vmatmul.mubr.msk.f32.vlgmr.msra.gmra.mxu1 %vm1037_vm2, %v1888_v33  ;;  %v2882_v33 = vld [vmem:[%s4392_s12] ss:$0 sm:$0xff] }
 0x595   : > { %3186 = vmatpush3.msra.mxu1 %v2118_v32  ;;  %v3158_v35 = vpop.f32.mrf.mxu1  ;;  %3193 = vmatprep.mubr.msk.f32.mxu1 %vm3489_vm1, %v3488_v2 }
 0x596   : > { %3187 = vmatprep.subr.mxu1 %v3488_v2  ;;  %v2883_v35 = vld [vmem:[%s4393_s13] ss:$0 sm:$0xff] }
 0x597   : > { %3188 = vmatpush3.msra.mxu1 %v2117_v34  ;;  %v1961_v36 = vpop.f32.mrf.mxu1 }
 0x598   : > { %3189 = vmatprep.subr.mxu1 %v3488_v2 }
 0x599   : > { %3190 = vmatpush3.msra.mxu1 %v2116_v29  ;;  %v3163_v39 = vpop.f32.mrf.mxu1 }
 0x59a   : > { %3191 = vmatprep.subr.mxu1 %v3488_v2  ;;  %v2567_v39 = vld [vmem:[%s4396_s16 + $0x50] sm:$0xff] }
 0x59b   : > { %3192 = vmatpush3.msra.mxu1 %v2115_v37  ;;  %v2568_v37 = vld [vmem:[%s4396_s16 + $0x58] sm:$0xff] }
 0x59c   : > { %3194 = vmatmul.mubr.msk.f32.vlgmr.msra.gmra.mxu1 %vm1037_vm2, %v1961_v36  ;;  %3196 = vmatprep.subr.mxu1 %v3488_v2 }
 0x59d   : > { %3197 = vmatpush3.msra.mxu1 %v2122_v40  ;;  %3204 = vmatprep.mubr.msk.f32.mxu1 %vm3489_vm1, %v3488_v2  ;;  %v2566_v40 = vld [vmem:[%s4396_s16 + $0x48] sm:$0xff] }
 0x59e   : > { %3198 = vmatprep.subr.mxu1 %v3488_v2 }
 0x59f   : > { %3199 = vmatpush3.msra.mxu1 %v2121_v41  ;;  %v2565_v41 = vld [vmem:[%s4396_s16 + $0x40] sm:$0xff] }
 0x5a0   : > { %3200 = vmatprep.subr.mxu1 %v3488_v2 }
 0x5a1   : > { %3201 = vmatpush3.msra.mxu1 %v2120_v42  ;;  %v2564_v42 = vld [vmem:[%s4396_s16 + $0x38] sm:$0xff] }
 0x5a2   : > { %3202 = vmatprep.subr.mxu1 %v3488_v2 }
 0x5a3   : > { %3203 = vmatpush3.msra.mxu1 %v2119_v43  ;;  %v2563_v43 = vld [vmem:[%s4396_s16 + $0x30] sm:$0xff] }
 0x5a4   : > { %3207 = vmatprep.subr.mxu1 %v3488_v2 }
 0x5b9   : > { %v2034_v46 = vpop.f32.mrf.mxu1 }
 0x5ba   : > { %3205 = vmatmul.mubr.msk.f32.vlgmr.msra.gmra.mxu1 %vm1037_vm2, %v2034_v46  ;;  %v2561_v46 = vld [vmem:[%s4396_s16 + $0x20] sm:$0xff] }
 0x5bb   : > { %3208 = vmatpush3.msra.mxu1 %v2126_v44  ;;  %v3168_v48 = vpop.f32.mrf.mxu1  ;;  %3215 = vmatprep.mubr.msk.f32.mxu1 %vm3489_vm1, %v3488_v2  ;;  %v2562_v44 = vld [vmem:[%s4396_s16 + $0x28] sm:$0xff] }
 0x5bc   : > { %3209 = vmatprep.subr.mxu1 %v3488_v2  ;;  %v2559_v48 = vld [vmem:[%s4396_s16 + $0x10] sm:$0xff] }
 0x5bd   : > { %3210 = vmatpush3.msra.mxu1 %v2125_v47  ;;  %v2107_v49 = vpop.f32.mrf.mxu1  ;;  %v2560_v47 = vld [vmem:[%s4396_s16 + $0x18] sm:$0xff] }
 0x5be   : > { %3211 = vmatprep.subr.mxu1 %v3488_v2 }
 0x5bf   : > { %3212 = vmatpush3.msra.mxu1 %v2124_v11  ;;  %v3173_v51 = vpop.f32.mrf.mxu1  ;;  %v2558_v11 = vld [vmem:[%s4396_s16 + $0x8] sm:$0xff] }
 0x5c0   : > { %3213 = vmatprep.subr.mxu1 %v3488_v2  ;;  %v2665_v51 = vld [vmem:[%s4398_s18 + $0x70] sm:$0xff] }
 0x5c1   : > { %3214 = vmatpush3.msra.mxu1 %v2123_v50  ;;  %v2666_v50 = vld [vmem:[%s4398_s18 + $0x78] sm:$0xff] }
 0x5c2   : > { %3216 = vmatmul.mubr.msk.f32.vlgmr.msra.gmra.mxu1 %vm1037_vm2, %v2107_v49  ;;  %3253 = vmatprep.subr.mxu1 %v3488_v2  ;;  %v2557_v49 = vld [vmem:[%s4396_s16] sm:$0xff] }
 0x5c3   : > { %3285 = vmatprep.mubr.msk.f32.mxu1 %vm3489_vm1, %v3488_v2  ;;  %3254 = vmatpush3.msra.mxu1 %v2572_v25 }
 0x5c4   : > { %3255 = vmatprep.subr.mxu1 %v3488_v2 }
 0x5c5   : > { %3256 = vmatpush3.msra.mxu1 %v2571_v23 }
 0x5c6   : > { %3257 = vmatprep.subr.mxu1 %v3488_v2 }
 0x5c7   : > { %3258 = vmatpush3.msra.mxu1 %v2570_v26 }
 0x5c8   : > { %3259 = vmatprep.subr.mxu1 %v3488_v2 }
 0x5c9   : > { %3260 = vmatpush3.msra.mxu1 %v2569_v27 }
 0x5ca   : > { %3261 = vmatprep.subr.mxu1 %v3488_v2 }
 0x5cb   : > { %3262 = vmatpush3.msra.mxu1 %v2568_v37 }
 0x5cc   : > { %3263 = vmatprep.subr.mxu1 %v3488_v2 }
 0x5cd   : > { %3264 = vmatpush3.msra.mxu1 %v2567_v39 }
 0x5ce   : > { %3265 = vmatprep.subr.mxu1 %v3488_v2 }
 0x5cf   : > { %3266 = vmatpush3.msra.mxu1 %v2566_v40 }
 0x5d0   : > { %3267 = vmatprep.subr.mxu1 %v3488_v2 }
 0x5d1   : > { %3268 = vmatpush3.msra.mxu1 %v2565_v41 }
 0x5d2   : > { %3269 = vmatprep.subr.mxu1 %v3488_v2 }
 0x5d3   : > { %3270 = vmatpush3.msra.mxu1 %v2564_v42 }
 0x5d4   : > { %3271 = vmatprep.subr.mxu1 %v3488_v2 }
 0x5d5   : > { %3272 = vmatpush3.msra.mxu1 %v2563_v43 }
 0x5d6   : > { %3273 = vmatprep.subr.mxu1 %v3488_v2 }
 0x5d7   : > { %3274 = vmatpush3.msra.mxu1 %v2562_v44 }
 0x5d8   : > { %3275 = vmatprep.subr.mxu1 %v3488_v2 }
 0x5d9   : > { %3276 = vmatpush3.msra.mxu1 %v2561_v46 }
 0x5da   : > { %3277 = vmatprep.subr.mxu1 %v3488_v2 }
 0x5db   : > { %3278 = vmatpush3.msra.mxu1 %v2560_v47 }
 0x5dc   : > { %3279 = vmatprep.subr.mxu1 %v3488_v2 }
 0x5dd   : > { %3280 = vmatpush3.msra.mxu1 %v2559_v48 }
 0x5de   : > { %3281 = vmatprep.subr.mxu1 %v3488_v2 }
 0x5df   : > { %3282 = vmatpush3.msra.mxu1 %v2558_v11 }
 0x5e0   : > { %3283 = vmatprep.subr.mxu1 %v3488_v2 }
 0x5e1   : > { %3284 = vmatpush3.msra.mxu1 %v2557_v49 }
 0x654   : > { %v2196_v52 = vpop.f32.mrf.mxu1 }
 0x656   : > { %v3184_v53 = vpop.f32.mrf.mxu1 }
 0x657   : > { %v2663_v53 = vld [vmem:[%s4398_s18 + $0x60] sm:$0xff] }
 0x65c   : > { %v2269_v54 = vpop.f32.mrf.mxu1 }
 0x65d   : > { %v2419_v58 = vadd.f32 %v2269_v54, %v2196_v52  ;;  %v2664_v52 = vld [vmem:[%s4398_s18 + $0x68] sm:$0xff]  ;;  %v2662_v54 = vld [vmem:[%s4398_s18 + $0x58] sm:$0xff] }
 0x65e   : > { %v3195_v55 = vpop.f32.mrf.mxu1 }
 0x65f   : > { %v2661_v55 = vld [vmem:[%s4398_s18 + $0x50] sm:$0xff] }
 0x67a   : > { %v2342_v56 = vpop.f32.mrf.mxu1 }
 0x67b   : > { %v2420_v59 = vadd.f32 %v2419_v58, %v2342_v56  ;;  %v2660_v56 = vld [vmem:[%s4398_s18 + $0x48] sm:$0xff]  ;;  %v2658_v58 = vld [vmem:[%s4398_s18 + $0x38] sm:$0xff] }
 0x67c   : > { %v3206_v57 = vpop.f32.mrf.mxu1 }
 0x67d   : > { %v2659_v57 = vld [vmem:[%s4398_s18 + $0x40] sm:$0xff] }
 0x682   : > { %v2415_v60 = vpop.f32.mrf.mxu1 }
 0x683   : > { %v2421_v62 = vadd.f32 %v2420_v59, %v2415_v60  ;;  %v2657_v59 = vld [vmem:[%s4398_s18 + $0x30] sm:$0xff]  ;;  %v2656_v60 = vld [vmem:[%s4398_s18 + $0x28] sm:$0xff] }
 0x684   : > { %v3217_v63 = vpop.f32.mrf.mxu1 }
 0x685   : > { %v2429_v0 = vadd.f32 %v2881_v61, %v2421_v62  ;;  %v2655_v61 = vld [vmem:[%s4398_s18 + $0x20] sm:$0xff]  ;;  %v2654_v62 = vld [vmem:[%s4398_s18 + $0x18] sm:$0xff] }
 0x686   : > { %v2884_v63 = vld [vmem:[%s4395_s15] ss:$0 sm:$0xff] }
 0x687   : > { %v4122_v3 = vadd.f32 %v3409_v1, %v2429_v0 }
 0x689   : > { %2431 = vadd.xlane.f32.xlu1 %v4122_v3 }
 0x712   : > { %v2432_v8 = vpop.xlane.xlu1 %2431 }
 0x713   : > { %v2433_v9 = vmul.f32 0.03125, %v2432_v8 }
 0x715   : > { %v2434_v10 = vsub.f32 %v4122_v3, %v2433_v9 }
 0x717   : > { %v2435_v12 = vmul.f32 %v3703_v15, %v2434_v10  ;;  %v2468_v15 = vld [vmem:[%s4394_s14 + $0x48] sm:$0xff]  ;;  %v2653_v10 = vld [vmem:[%s4398_s18 + $0x10] sm:$0xff] }
 0x718   : > { %3231 = vmatpush3.msra.mxu0 %v2468_v15 }
 0x719   : > { %v2436_v13 = vmul.f32 %v2435_v12, %v2435_v12  ;;  %3232 = vmatprep.subr.mxu0 %v3488_v2 }
 0x71a   : > { %3233 = vmatpush3.msra.mxu0 %v2467_v16 }
 0x71b   : > { %2437 = vadd.xlane.f32.xlu0 %v2436_v13  ;;  %3234 = vmatprep.subr.mxu0 %v3488_v2  ;;  %v2651_v13 = vld [vmem:[%s4398_s18] sm:$0xff] }
 0x71c   : > { %3235 = vmatpush3.msra.mxu0 %v2466_v17 }
 0x71d   : > { %3236 = vmatprep.subr.mxu0 %v3488_v2 }
 0x71e   : > { %3237 = vmatpush3.msra.mxu0 %v2465_v45 }
 0x71f   : > { %3238 = vmatprep.subr.mxu0 %v3488_v2 }
 0x720   : > { %3239 = vmatpush3.msra.mxu0 %v2464_v18 }
 0x721   : > { %3240 = vmatprep.subr.mxu0 %v3488_v2 }
 0x722   : > { %3241 = vmatpush3.msra.mxu0 %v2463_v19 }
 0x723   : > { %3242 = vmatprep.subr.mxu0 %v3488_v2 }
 0x724   : > { %3243 = vmatpush3.msra.mxu0 %v2462_v20 }
 0x725   : > { %3244 = vmatprep.subr.mxu0 %v3488_v2 }
 0x726   : > { %3245 = vmatpush3.msra.mxu0 %v2461_v22 }
 0x727   : > { %3246 = vmatprep.subr.mxu0 %v3488_v2 }
 0x728   : > { %3247 = vmatpush3.msra.mxu0 %v2460_v21 }
 0x729   : > { %3248 = vmatprep.subr.mxu0 %v3488_v2 }
 0x72a   : > { %3249 = vmatpush3.msra.mxu0 %v2459_v24 }
 0x72b   : > { %3288 = vmatprep.subr.mxu0 %v3488_v2 }
 0x7a4   : > { %v2438_v28 = vpop.xlane.xlu0 %2437 }
 0x7a5   : > { %v2439_v30 = vmul.f32 0.03125, %v2438_v28 }
 0x7a7   : > { %v2440_v31 = vadd.f32 1e-05, %v2439_v30 }
 0x7a9   : > { %3405 = vrsqrt.f32 %v2440_v31 }
 0x7b6   : > { %v3406_v32 = vpop.eup %3405 }
 0x7b7   : > { %v2442_v34 = vmul.f32 %v3406_v32, %v2435_v12  ;;  %v2652_v12 = vld [vmem:[%s4398_s18 + $0x8] sm:$0xff] }
 0x7b9   : > { %v2450_v29 = vmul.f32 %v2882_v33, %v2442_v34 }
 0x7bb   : > { %v2458_v36 = vadd.f32 %v2883_v35, %v2450_v29 }
 0x7bd   : > { %3251 = vmatmul.mubr.f32.vlgmr.msra.gmra.mxu0 %v2458_v36 }
 0x7be   : > { %3320 = vmatprep.mubr.msk.f32.mxu0 %vm3489_vm1, %v3488_v2  ;;  %3289 = vmatpush3.msra.mxu0 %v2666_v50 }
 0x7bf   : > { %3290 = vmatprep.subr.mxu0 %v3488_v2 }
 0x7c0   : > { %3291 = vmatpush3.msra.mxu0 %v2665_v51 }
 0x7c1   : > { %3292 = vmatprep.subr.mxu0 %v3488_v2 }
 0x7c2   : > { %3293 = vmatpush3.msra.mxu0 %v2664_v52 }
 0x7c3   : > { %3294 = vmatprep.subr.mxu0 %v3488_v2 }
 0x7c4   : > { %3295 = vmatpush3.msra.mxu0 %v2663_v53 }
 0x7c5   : > { %3296 = vmatprep.subr.mxu0 %v3488_v2 }
 0x7c6   : > { %3297 = vmatpush3.msra.mxu0 %v2662_v54 }
 0x7c7   : > { %3298 = vmatprep.subr.mxu0 %v3488_v2 }
 0x7c8   : > { %3299 = vmatpush3.msra.mxu0 %v2661_v55 }
 0x7c9   : > { %3300 = vmatprep.subr.mxu0 %v3488_v2 }
 0x7ca   : > { %3301 = vmatpush3.msra.mxu0 %v2660_v56 }
 0x7cb   : > { %3302 = vmatprep.subr.mxu0 %v3488_v2 }
 0x7cc   : > { %3303 = vmatpush3.msra.mxu0 %v2659_v57 }
 0x7cd   : > { %3304 = vmatprep.subr.mxu0 %v3488_v2 }
 0x7ce   : > { %3305 = vmatpush3.msra.mxu0 %v2658_v58 }
 0x7cf   : > { %3306 = vmatprep.subr.mxu0 %v3488_v2 }
 0x7d0   : > { %3307 = vmatpush3.msra.mxu0 %v2657_v59 }
 0x7d1   : > { %3308 = vmatprep.subr.mxu0 %v3488_v2 }
 0x7d2   : > { %3309 = vmatpush3.msra.mxu0 %v2656_v60 }
 0x7d3   : > { %3310 = vmatprep.subr.mxu0 %v3488_v2 }
 0x7d4   : > { %3311 = vmatpush3.msra.mxu0 %v2655_v61 }
 0x7d5   : > { %3312 = vmatprep.subr.mxu0 %v3488_v2 }
 0x7d6   : > { %3313 = vmatpush3.msra.mxu0 %v2654_v62 }
 0x7d7   : > { %3314 = vmatprep.subr.mxu0 %v3488_v2 }
 0x7d8   : > { %3315 = vmatpush3.msra.mxu0 %v2653_v10 }
 0x7d9   : > { %3316 = vmatprep.subr.mxu0 %v3488_v2 }
 0x7da   : > { %3317 = vmatpush3.msra.mxu0 %v2652_v12 }
 0x7db   : > { %3318 = vmatprep.subr.mxu0 %v3488_v2  ;;  %v2886_v2 = vld [vmem:[%s4437_s19] ss:$0 sm:$0xff] }
 0x7dc   : > { %3319 = vmatpush3.msra.mxu0 %v2651_v13 }
 0x87d   : > { %v2548_v0 = vpop.f32.mrf.mxu0 }
 0x87e   : > { %v2549_v1 = vadd.f32 %v2884_v63, %v2548_v0 }
 0x87f   : > { %v3252_v4 = vpop.f32.mrf.mxu0 }
 0x880   : > { %v2553_v5 = vmul.f32 0.70710677, %v2549_v1  ;;  %v2552_v7 = vmul.f32 0.5, %v2549_v1 }
 0x882   : > { %3407 = verf.f32 %v2553_v5 }
 0x88f   : > { %v3408_v6 = vpop.eup %3407 }
 0x890   : > { %v2555_v8 = vadd.f32 1.0, %v3408_v6 }
 0x892   : > { %v2556_v9 = vmul.f32 %v2555_v8, %v2552_v7 }
 0x894   : > { %3286 = vmatmul.mubr.f32.vlgmr.msra.gmra.mxu1 %v2556_v9 }
 0x954   : > { %v2646_v14 = vpop.f32.mrf.mxu1 }
 0x955   : > { %v2647_v15 = vadd.f32 %v2885_v38, %v2646_v14 }
 0x956   : > { %v3287_v16 = vpop.f32.mrf.mxu1 }
 0x957   : > { %v2650_v17 = vadd.f32 %v2647_v15, %v4122_v3 }
 0x959   : > { %3321 = vmatmul.mubr.f32.vlgmr.msra.gmra.mxu0 %v2650_v17 }
 0xa19   : > { %v2740_v45 = vpop.f32.mrf.mxu0 }
 0xa1a   : > { %v2741_v18 = vadd.f32 %v2886_v2, %v2740_v45 }
 0xa1b   : > { %v3322_v3 = vpop.f32.mrf.mxu0 }
 0xa1c   : > { %2744 = vst [vmem:[%s655_s27] sm:$0xff] %v2741_v18 }
 0xa1d   : > { %3423 = shalt.err (!%p3420_p5)
}
 0xa1e   : > { %s3424_s1 = scalar_lea.hbm %s4340_s7, 128  ;;  %s3428_s2 = scalar_lea.hbm %s4438_s5, 256 }
 0xa1f   : > { %p3425_p6 = scmp.ne.s32.totalorder %s4340_s7, %s3424_s1  ;;  %p3429_p10 = scmp.lt.s32.totalorder %s4340_s7, %s4438_s5 }
 0xa20   : > { %p3430_p11 = scmp.lt.s32.totalorder %s3428_s2, %s3424_s1 }
 0xa21   : > { %p3426_p7 = pnand %p3425_p6, %p3641_p4 }
 0xa22   : > { %p3431_p12 = por %p3430_p11, %p3429_p10 }
 0xa23   : > { %p3427_p9 = pneg %p3426_p7 }
 0xa25   : > { %p3432_p13 = pnand %p3431_p12, %p3427_p9 }
 0xa27   : > { %3435 = shalt.err (!%p3432_p13)
}
 0xa28   : > { %3323 = dma.vmem_to_hbm [thread:$0]  (%p3641_p4), %s2761_s6, 128, %s4340_s7, %s2746_s8  }
 0xa29 PF: > { %s4439_s9 = sld [smem:[#allocation7_spill]]  ;;  %p3329_p0 = scmp.ge.s32.totalorder %s3486_s25, 2 }
 0xa2b   : > { %p3326_p1 = pnand %p3329_p0, %p3648_p8 }
 0xa2d   : > { %p3327_p2 = pneg %p3326_p1 }
 0xa2f   : > { %s2772_s26 = sand.u32 1, %s4439_s9  }
 0xa30   : > { %s2773_s21 = scalar_lea.sflag [#allocation5], %s2772_s26 }
 0xa31   : > { %3461 = dma.done.wait (%p3327_p2), %s2773_s21, 128  }
 0xa32   : > { %3463 = vsyncadd (%p3327_p2), %s2773_s21, 4294967168  ;;  %s33_s25 = sadd.s32 1, %s3486_s25   ;;  %s4440_s24 = sld [smem:[#allocation8_spill]] }
 0xa33   : > { %p30_p3 = scmp.ge.s32.totalorder %s33_s25, 4   ;;  %s4441_s2 = sld [smem:[#allocation9_spill]] }
 0xa34   : > { %s4442_s1 = smov %s3470_s22  ;;  %s4443_s22 = smov %s3474_s23 }
 0xa35   : > { %s4444_s23 = smov %s3654_s0  ;;  %32 = sbr.rel (!%p30_p3) target bundleno = 17 (0x11), region = 142 }
 0xa3a   :  { %2778 = vsyncpa [#allocation5], 1 }
 0xa3b   :  { %2780 = vsyncpa [#allocation5 + $0x1], 1 }

</bundles_post_ra>
